<compile_context>
chip_gen: v7x
topology: tpu7x:2x2x1
jax: 0.10.0
libtpu: 0.0.40
codegen_flags: <defaults>
</compile_context>

<pallas_src>
import numpy as np
import jax
import jax.numpy as jnp
from jax.experimental import pallas as pl
from jax.experimental.pallas import tpu as pltpu


# ---------------- static im2col / pool-window gather indices ----------------

def _pool_conv_gather_indices(in_hw, k=5):
    """Flat spatial indices for a k x k valid conv followed by a 2x2 max-pool,
    grouped as (pool_window=4, pooled_position, k*k)."""
    out_p = (in_hw - k + 1) // 2
    idx = np.empty((4, out_p * out_p, k * k), dtype=np.int32)
    for w, (wr, wc) in enumerate(((0, 0), (0, 1), (1, 0), (1, 1))):
        for p in range(out_p * out_p):
            pr, pc = divmod(p, out_p)
            for o in range(k * k):
                di, dj = divmod(o, k)
                idx[w, p, o] = (2 * pr + wr + di) * in_hw + (2 * pc + wc + dj)
    return idx


_IDX1 = _pool_conv_gather_indices(28)     # (4, 144, 25), indices into 28*28
_IDX2 = _pool_conv_gather_indices(12)     # (4, 16, 25),  indices into 12*12

_VMEM = pl.BlockSpec(memory_space=pltpu.MemorySpace.VMEM)


# ------------------------------ Pallas kernels -------------------------------

def _conv1_pool_relu_kernel(p_ref, w_ref, b_ref, o_ref):
    # p_ref: (4*N*144, 25) im2col patches, rows ordered (pool_window, n, pos)
    # w_ref: (25, 10) flattened conv1 weight     b_ref: (1, 10)
    # o_ref: (N*144, 10) relu(maxpool(conv1(x))), rows ordered (n, pos)
    q = o_ref.shape[0]                       # N*144, tile-aligned slices below
    m = jnp.dot(p_ref[...], w_ref[...], preferred_element_type=jnp.float32)
    y = jnp.maximum(jnp.maximum(m[0:q], m[q:2 * q]),
                    jnp.maximum(m[2 * q:3 * q], m[3 * q:4 * q]))  # 2x2 max-pool
    # per-channel bias commutes with the max: max(conv) + b == max(conv + b)
    o_ref[...] = jnp.maximum(y + b_ref[...], 0.0)


def _conv2_pool_fc_kernel(p_ref, w2_ref, b2_ref, w1p_ref, fb1_ref,
                          fw2_ref, fb2_ref, o_ref):
    # p_ref  : (4*16*N, 250) conv2 im2col patches, rows ordered (window, pos, n)
    # w2_ref : (250, 20)      b2_ref : (1, 20)
    # w1p_ref: (16, 20, 50)   fc1 weight regrouped per pooled position
    # fb1_ref: (1, 50)        fw2_ref: (50, 10)      fb2_ref: (1, 10)
    # o_ref  : (N, 10)        log-probabilities
    n = o_ref.shape[0]
    q = 16 * n
    m = jnp.dot(p_ref[...], w2_ref[...], preferred_element_type=jnp.float32)
    pooled = jnp.maximum(jnp.maximum(m[0:q], m[q:2 * q]),
                         jnp.maximum(m[2 * q:3 * q], m[3 * q:4 * q]))
    pooled = jnp.maximum(pooled + b2_ref[...], 0.0)     # (16*N, 20), rows (pos, n)

    # fc1 contracts over (pooled position, channel); positions sit on the
    # sublane axis, so accumulate one small matmul per position (16 total,
    # ~32 KFLOP in all -- negligible next to launch overhead).
    h = jnp.zeros((n, 50), jnp.float32) + fb1_ref[...]
    for p in range(16):
        h = h + jnp.dot(pooled[n * p:n * p + n, :], w1p_ref[p],
                        preferred_element_type=jnp.float32)
    h = jnp.maximum(h, 0.0)                  # relu3 (fc dropout = identity)

    y = jnp.dot(h, fw2_ref[...], preferred_element_type=jnp.float32) + fb2_ref[...]
    mx = jnp.max(y, axis=-1, keepdims=True)  # log_softmax over the 10 classes
    lse = jnp.log(jnp.sum(jnp.exp(y - mx), axis=-1, keepdims=True)) + mx
    o_ref[...] = y - lse


def _conv1_stage(p1, w1f, b1r, n):
    return pl.pallas_call(
        _conv1_pool_relu_kernel,
        out_shape=jax.ShapeDtypeStruct((n * 144, 10), jnp.float32),
        in_specs=[_VMEM, _VMEM, _VMEM],
        out_specs=_VMEM,
    )(p1, w1f, b1r)


def _conv2_fc_stage(p2, w2f, b2r, w1p, fb1r, fw2t, fb2r, n):
    return pl.pallas_call(
        _conv2_pool_fc_kernel,
        out_shape=jax.ShapeDtypeStruct((n, 10), jnp.float32),
        in_specs=[_VMEM] * 7,
        out_specs=_VMEM,
    )(p2, w2f, b2r, w1p, fb1r, fw2t, fb2r)


# -------------------------- parameter re-layout -------------------------------

def prepare_params(params):
    """One-time conversion of torch-layout parameters into kernel layouts."""
    w1, b1, w2, b2, fw1, fb1, fw2, fb2 = params
    w1f = w1.reshape(10, 25).T                         # (25, 10)
    w2f = w2.transpose(2, 3, 1, 0).reshape(250, 20)    # rows = (di, dj, ci)
    w1p = fw1.reshape(50, 20, 16).transpose(2, 1, 0)   # (16, 20, 50): [pos, ci, out]
    return (w1f, b1.reshape(1, 10), w2f, b2.reshape(1, 20),
            w1p, fb1.reshape(1, 50), fw2.T, fb2.reshape(1, 10))


# ------------------------------ forward pass ----------------------------------

@jax.jit
def net_forward(x, prepped):
    w1f, b1r, w2f, b2r, w1p, fb1r, fw2t, fb2r = prepped
    n = x.shape[0]

    # stage 1: conv1 -> maxpool2 -> relu  (one fused kernel, one matmul)
    p1 = x.reshape(n, 28 * 28)[:, _IDX1]                       # (N, 4, 144, 25)
    p1 = p1.transpose(1, 0, 2, 3).reshape(4 * n * 144, 25)     # rows (w, n, pos)
    y1 = _conv1_stage(p1, w1f, b1r, n).reshape(n, 144, 10)

    # stage 2: conv2 -> Dropout2d -> maxpool2 -> relu -> view(-1,320) -> fc1
    #          -> relu -> dropout -> fc2 -> log_softmax  (one fused kernel)
    # TODO(synk): Dropout2d / fc dropout are inference-mode identities here;
    #             training-mode random channel dropout is not implemented.
    p2 = y1[:, _IDX2, :]                                       # (N, 4, 16, 25, 10)
    p2 = p2.transpose(1, 2, 0, 3, 4).reshape(4 * 16 * n, 250)  # rows (w, pos, n)
    return _conv2_fc_stage(p2, w2f, b2r, w1p, fb1r, fw2t, fb2r, n)


# ------------------------- pure-JAX reference (test) --------------------------

def _reference(x, params):
    w1, b1, w2, b2, fw1, fb1, fw2, fb2 = params
    hi = jax.lax.Precision.HIGHEST

    def conv(z, w, b):
        k = w.shape[2]
        ho, wo = z.shape[2] - k + 1, z.shape[3] - k + 1
        out = jnp.zeros((z.shape[0], w.shape[0], ho, wo), jnp.float32)
        out = out + b[None, :, None, None]
        for di in range(k):
            for dj in range(k):
                out = out + jnp.einsum('ncij,oc->noij',
                                       z[:, :, di:di + ho, dj:dj + wo],
                                       w[:, :, di, dj], precision=hi)
        return out

    def pool2(z):
        nn, c, hh, ww = z.shape
        return z.reshape(nn, c, hh // 2, 2, ww // 2, 2).max(axis=(3, 5))

    y = jnp.maximum(pool2(conv(x, w1, b1)), 0.0)
    y = jnp.maximum(pool2(conv(y, w2, b2)), 0.0)
    y = y.reshape(x.shape[0], 320)
    h = jnp.maximum(jnp.dot(y, fw1.T, precision=hi) + fb1, 0.0)
    o = jnp.dot(h, fw2.T, precision=hi) + fb2
    mref = jnp.max(o, axis=1, keepdims=True)
    lse = jnp.log(jnp.sum(jnp.exp(o - mref), axis=1, keepdims=True)) + mref
    return o - lse


# ----------------------------------- main --------------------------------------

if __name__ == "__main__":
    key = jax.random.PRNGKey(0)
    ks = jax.random.split(key, 9)

    # MNIST-sized input so view(-1, 320) is consistent: (N=2, C=1, 28, 28)
    x = jax.random.normal(ks[0], (2, 1, 28, 28), jnp.float32)

    # deterministic synthetic parameters (torch shape conventions)
    params = (
        jax.random.normal(ks[1], (10, 1, 5, 5), jnp.float32) * 0.1,   # conv1.w
        jax.random.normal(ks[2], (10,), jnp.float32) * 0.1,           # conv1.b
        jax.random.normal(ks[3], (20, 10, 5, 5), jnp.float32) * 0.1,  # conv2.w
        jax.random.normal(ks[4], (20,), jnp.float32) * 0.1,           # conv2.b
        jax.random.normal(ks[5], (50, 320), jnp.float32) * 0.05,      # fc1.w
        jax.random.normal(ks[6], (50,), jnp.float32) * 0.05,          # fc1.b
        jax.random.normal(ks[7], (10, 50), jnp.float32) * 0.05,       # fc2.w
        jax.random.normal(ks[8], (10,), jnp.float32) * 0.05,          # fc2.b
    )

    prepped = prepare_params(params)          # one-time weight re-layout
    out = net_forward(x, prepped)
    jax.block_until_ready(out)
    assert out.shape == (2, 10)

    # sanity-check against a pure-JAX reference of the torch module
    ref = _reference(x, params)
    assert float(jnp.max(jnp.abs(out - ref))) < 5e-2

    print("KERNEL_OK")
</pallas_src>

<mosaic_0001>
module attributes {stable_mosaic.version = 11 : i64} {
  func.func @_conv1_pool_relu_kernel(%arg0: memref<1152x25xf32, #tpu.memory_space<vmem>>, %arg1: memref<25x10xf32, #tpu.memory_space<vmem>>, %arg2: memref<1x10xf32, #tpu.memory_space<vmem>>, %arg3: memref<288x10xf32, #tpu.memory_space<vmem>>) attributes {dimension_semantics = [], scalar_prefetch = 0 : i64, scratch_operands = 0 : i64, tpu.core_type = #tpu.core_type<tc>} {
    %c0 = arith.constant 0 : index
    %c0_0 = arith.constant 0 : index
    %0 = vector.load %arg0[%c0, %c0_0] : memref<1152x25xf32, #tpu.memory_space<vmem>>, vector<1152x25xf32>
    %c0_1 = arith.constant 0 : index
    %c0_2 = arith.constant 0 : index
    %1 = vector.load %arg1[%c0_1, %c0_2] : memref<25x10xf32, #tpu.memory_space<vmem>>, vector<25x10xf32>
    %cst = arith.constant dense<0.000000e+00> : vector<1152x10xf32>
    %2 = tpu.matmul %0, %1, %cst {dimension_numbers = #tpu.dot_dimension_numbers<[1], [0], [0], [1], [0, 0, 1, 1], [], []>} : vector<1152x25xf32>, vector<25x10xf32>, vector<1152x10xf32> -> vector<1152x10xf32>
    %3 = vector.extract_strided_slice %2 {offsets = [0, 0], sizes = [288, 10], strides = [1, 1]} : vector<1152x10xf32> to vector<288x10xf32>
    %4 = vector.extract_strided_slice %2 {offsets = [288, 0], sizes = [288, 10], strides = [1, 1]} : vector<1152x10xf32> to vector<288x10xf32>
    %5 = arith.maximumf %3, %4 : vector<288x10xf32>
    %6 = vector.extract_strided_slice %2 {offsets = [576, 0], sizes = [288, 10], strides = [1, 1]} : vector<1152x10xf32> to vector<288x10xf32>
    %7 = vector.extract_strided_slice %2 {offsets = [864, 0], sizes = [288, 10], strides = [1, 1]} : vector<1152x10xf32> to vector<288x10xf32>
    %8 = arith.maximumf %6, %7 : vector<288x10xf32>
    %9 = arith.maximumf %5, %8 : vector<288x10xf32>
    %c0_3 = arith.constant 0 : index
    %c0_4 = arith.constant 0 : index
    %10 = vector.load %arg2[%c0_3, %c0_4] : memref<1x10xf32, #tpu.memory_space<vmem>>, vector<1x10xf32>
    %11 = vector.broadcast %10 : vector<1x10xf32> to vector<288x10xf32>
    %12 = arith.addf %9, %11 : vector<288x10xf32>
    %cst_5 = arith.constant 0.000000e+00 : f32
    %13 = vector.broadcast %cst_5 : f32 to vector<288x10xf32>
    %14 = arith.maximumf %12, %13 : vector<288x10xf32>
    %c0_6 = arith.constant 0 : index
    %c0_7 = arith.constant 0 : index
    %15 = vector.load %arg3[%c0_6, %c0_7] : memref<288x10xf32, #tpu.memory_space<vmem>>, vector<288x10xf32>
    tpu.vector_store %arg3[%c0_6, %c0_7], %14 {strides = array<i32>} : memref<288x10xf32, #tpu.memory_space<vmem>>, vector<288x10xf32>,
    return
  }
}

module attributes {stable_mosaic.version = 11 : i64} {
  func.func @_conv2_pool_fc_kernel(%arg0: memref<128x250xf32, #tpu.memory_space<vmem>>, %arg1: memref<250x20xf32, #tpu.memory_space<vmem>>, %arg2: memref<1x20xf32, #tpu.memory_space<vmem>>, %arg3: memref<16x20x50xf32, #tpu.memory_space<vmem>>, %arg4: memref<1x50xf32, #tpu.memory_space<vmem>>, %arg5: memref<50x10xf32, #tpu.memory_space<vmem>>, %arg6: memref<1x10xf32, #tpu.memory_space<vmem>>, %arg7: memref<2x10xf32, #tpu.memory_space<vmem>>) attributes {dimension_semantics = [], scalar_prefetch = 0 : i64, scratch_operands = 0 : i64, tpu.core_type = #tpu.core_type<tc>} {
    %c0 = arith.constant 0 : index
    %c0_0 = arith.constant 0 : index
    %0 = vector.load %arg0[%c0, %c0_0] : memref<128x250xf32, #tpu.memory_space<vmem>>, vector<128x250xf32>
    %c0_1 = arith.constant 0 : index
    %c0_2 = arith.constant 0 : index
    %1 = vector.load %arg1[%c0_1, %c0_2] : memref<250x20xf32, #tpu.memory_space<vmem>>, vector<250x20xf32>
    %cst = arith.constant dense<0.000000e+00> : vector<128x20xf32>
    %2 = tpu.matmul %0, %1, %cst {dimension_numbers = #tpu.dot_dimension_numbers<[1], [0], [0], [1], [0, 0, 1, 1], [], []>} : vector<128x250xf32>, vector<250x20xf32>, vector<128x20xf32> -> vector<128x20xf32>
    %3 = vector.extract_strided_slice %2 {offsets = [0, 0], sizes = [32, 20], strides = [1, 1]} : vector<128x20xf32> to vector<32x20xf32>
    %4 = vector.extract_strided_slice %2 {offsets = [32, 0], sizes = [32, 20], strides = [1, 1]} : vector<128x20xf32> to vector<32x20xf32>
    %5 = arith.maximumf %3, %4 : vector<32x20xf32>
    %6 = vector.extract_strided_slice %2 {offsets = [64, 0], sizes = [32, 20], strides = [1, 1]} : vector<128x20xf32> to vector<32x20xf32>
    %7 = vector.extract_strided_slice %2 {offsets = [96, 0], sizes = [32, 20], strides = [1, 1]} : vector<128x20xf32> to vector<32x20xf32>
    %8 = arith.maximumf %6, %7 : vector<32x20xf32>
    %9 = arith.maximumf %5, %8 : vector<32x20xf32>
    %c0_3 = arith.constant 0 : index
    %c0_4 = arith.constant 0 : index
    %10 = vector.load %arg2[%c0_3, %c0_4] : memref<1x20xf32, #tpu.memory_space<vmem>>, vector<1x20xf32>
    %11 = vector.broadcast %10 : vector<1x20xf32> to vector<32x20xf32>
    %12 = arith.addf %9, %11 : vector<32x20xf32>
    %cst_5 = arith.constant 0.000000e+00 : f32
    %13 = vector.broadcast %cst_5 : f32 to vector<32x20xf32>
    %14 = arith.maximumf %12, %13 : vector<32x20xf32>
    %cst_6 = arith.constant 0.000000e+00 : f32
    %15 = vector.broadcast %cst_6 : f32 to vector<2x50xf32>
    %c0_7 = arith.constant 0 : index
    %c0_8 = arith.constant 0 : index
    %16 = vector.load %arg4[%c0_7, %c0_8] : memref<1x50xf32, #tpu.memory_space<vmem>>, vector<1x50xf32>
    %17 = vector.broadcast %16 : vector<1x50xf32> to vector<2x50xf32>
    %18 = arith.addf %15, %17 : vector<2x50xf32>
    %19 = vector.extract_strided_slice %14 {offsets = [0, 0], sizes = [2, 20], strides = [1, 1]} : vector<32x20xf32> to vector<2x20xf32>
    %c0_9 = arith.constant 0 : index
    %c0_10 = arith.constant 0 : index
    %c0_11 = arith.constant 0 : index
    %20 = vector.load %arg3[%c0_9, %c0_10, %c0_11] : memref<16x20x50xf32, #tpu.memory_space<vmem>>, vector<1x20x50xf32>
    %21 = vector.shape_cast %20 : vector<1x20x50xf32> to vector<20x50xf32>
    %cst_12 = arith.constant dense<0.000000e+00> : vector<2x50xf32>
    %22 = tpu.matmul %19, %21, %cst_12 {dimension_numbers = #tpu.dot_dimension_numbers<[1], [0], [0], [1], [0, 0, 1, 1], [], []>} : vector<2x20xf32>, vector<20x50xf32>, vector<2x50xf32> -> vector<2x50xf32>
    %23 = arith.addf %18, %22 : vector<2x50xf32>
    %24 = vector.extract_strided_slice %14 {offsets = [2, 0], sizes = [2, 20], strides = [1, 1]} : vector<32x20xf32> to vector<2x20xf32>
    %c1 = arith.constant 1 : index
    %c0_13 = arith.constant 0 : index
    %c0_14 = arith.constant 0 : index
    %25 = vector.load %arg3[%c1, %c0_13, %c0_14] : memref<16x20x50xf32, #tpu.memory_space<vmem>>, vector<1x20x50xf32>
    %26 = vector.shape_cast %25 : vector<1x20x50xf32> to vector<20x50xf32>
    %cst_15 = arith.constant dense<0.000000e+00> : vector<2x50xf32>
    %27 = tpu.matmul %24, %26, %cst_15 {dimension_numbers = #tpu.dot_dimension_numbers<[1], [0], [0], [1], [0, 0, 1, 1], [], []>} : vector<2x20xf32>, vector<20x50xf32>, vector<2x50xf32> -> vector<2x50xf32>
    %28 = arith.addf %23, %27 : vector<2x50xf32>
    %29 = vector.extract_strided_slice %14 {offsets = [4, 0], sizes = [2, 20], strides = [1, 1]} : vector<32x20xf32> to vector<2x20xf32>
    %c2 = arith.constant 2 : index
    %c0_16 = arith.constant 0 : index
    %c0_17 = arith.constant 0 : index
    %30 = vector.load %arg3[%c2, %c0_16, %c0_17] : memref<16x20x50xf32, #tpu.memory_space<vmem>>, vector<1x20x50xf32>
    %31 = vector.shape_cast %30 : vector<1x20x50xf32> to vector<20x50xf32>
    %cst_18 = arith.constant dense<0.000000e+00> : vector<2x50xf32>
    %32 = tpu.matmul %29, %31, %cst_18 {dimension_numbers = #tpu.dot_dimension_numbers<[1], [0], [0], [1], [0, 0, 1, 1], [], []>} : vector<2x20xf32>, vector<20x50xf32>, vector<2x50xf32> -> vector<2x50xf32>
    %33 = arith.addf %28, %32 : vector<2x50xf32>
    %34 = vector.extract_strided_slice %14 {offsets = [6, 0], sizes = [2, 20], strides = [1, 1]} : vector<32x20xf32> to vector<2x20xf32>
    %c3 = arith.constant 3 : index
    %c0_19 = arith.constant 0 : index
    %c0_20 = arith.constant 0 : index
    %35 = vector.load %arg3[%c3, %c0_19, %c0_20] : memref<16x20x50xf32, #tpu.memory_space<vmem>>, vector<1x20x50xf32>
    %36 = vector.shape_cast %35 : vector<1x20x50xf32> to vector<20x50xf32>
    %cst_21 = arith.constant dense<0.000000e+00> : vector<2x50xf32>
    %37 = tpu.matmul %34, %36, %cst_21 {dimension_numbers = #tpu.dot_dimension_numbers<[1], [0], [0], [1], [0, 0, 1, 1], [], []>} : vector<2x20xf32>, vector<20x50xf32>, vector<2x50xf32> -> vector<2x50xf32>
    %38 = arith.addf %33, %37 : vector<2x50xf32>
    %39 = vector.extract_strided_slice %14 {offsets = [8, 0], sizes = [2, 20], strides = [1, 1]} : vector<32x20xf32> to vector<2x20xf32>
    %c4 = arith.constant 4 : index
    %c0_22 = arith.constant 0 : index
    %c0_23 = arith.constant 0 : index
    %40 = vector.load %arg3[%c4, %c0_22, %c0_23] : memref<16x20x50xf32, #tpu.memory_space<vmem>>, vector<1x20x50xf32>
    %41 = vector.shape_cast %40 : vector<1x20x50xf32> to vector<20x50xf32>
    %cst_24 = arith.constant dense<0.000000e+00> : vector<2x50xf32>
    %42 = tpu.matmul %39, %41, %cst_24 {dimension_numbers = #tpu.dot_dimension_numbers<[1], [0], [0], [1], [0, 0, 1, 1], [], []>} : vector<2x20xf32>, vector<20x50xf32>, vector<2x50xf32> -> vector<2x50xf32>
    %43 = arith.addf %38, %42 : vector<2x50xf32>
    %44 = vector.extract_strided_slice %14 {offsets = [10, 0], sizes = [2, 20], strides = [1, 1]} : vector<32x20xf32> to vector<2x20xf32>
    %c5 = arith.constant 5 : index
    %c0_25 = arith.constant 0 : index
    %c0_26 = arith.constant 0 : index
    %45 = vector.load %arg3[%c5, %c0_25, %c0_26] : memref<16x20x50xf32, #tpu.memory_space<vmem>>, vector<1x20x50xf32>
    %46 = vector.shape_cast %45 : vector<1x20x50xf32> to vector<20x50xf32>
    %cst_27 = arith.constant dense<0.000000e+00> : vector<2x50xf32>
    %47 = tpu.matmul %44, %46, %cst_27 {dimension_numbers = #tpu.dot_dimension_numbers<[1], [0], [0], [1], [0, 0, 1, 1], [], []>} : vector<2x20xf32>, vector<20x50xf32>, vector<2x50xf32> -> vector<2x50xf32>
    %48 = arith.addf %43, %47 : vector<2x50xf32>
    %49 = vector.extract_strided_slice %14 {offsets = [12, 0], sizes = [2, 20], strides = [1, 1]} : vector<32x20xf32> to vector<2x20xf32>
    %c6 = arith.constant 6 : index
    %c0_28 = arith.constant 0 : index
    %c0_29 = arith.constant 0 : index
    %50 = vector.load %arg3[%c6, %c0_28, %c0_29] : memref<16x20x50xf32, #tpu.memory_space<vmem>>, vector<1x20x50xf32>
    %51 = vector.shape_cast %50 : vector<1x20x50xf32> to vector<20x50xf32>
    %cst_30 = arith.constant dense<0.000000e+00> : vector<2x50xf32>
    %52 = tpu.matmul %49, %51, %cst_30 {dimension_numbers = #tpu.dot_dimension_numbers<[1], [0], [0], [1], [0, 0, 1, 1], [], []>} : vector<2x20xf32>, vector<20x50xf32>, vector<2x50xf32> -> vector<2x50xf32>
    %53 = arith.addf %48, %52 : vector<2x50xf32>
    %54 = vector.extract_strided_slice %14 {offsets = [14, 0], sizes = [2, 20], strides = [1, 1]} : vector<32x20xf32> to vector<2x20xf32>
    %c7 = arith.constant 7 : index
    %c0_31 = arith.constant 0 : index
    %c0_32 = arith.constant 0 : index
    %55 = vector.load %arg3[%c7, %c0_31, %c0_32] : memref<16x20x50xf32, #tpu.memory_space<vmem>>, vector<1x20x50xf32>
    %56 = vector.shape_cast %55 : vector<1x20x50xf32> to vector<20x50xf32>
    %cst_33 = arith.constant dense<0.000000e+00> : vector<2x50xf32>
    %57 = tpu.matmul %54, %56, %cst_33 {dimension_numbers = #tpu.dot_dimension_numbers<[1], [0], [0], [1], [0, 0, 1, 1], [], []>} : vector<2x20xf32>, vector<20x50xf32>, vector<2x50xf32> -> vector<2x50xf32>
    %58 = arith.addf %53, %57 : vector<2x50xf32>
    %59 = vector.extract_strided_slice %14 {offsets = [16, 0], sizes = [2, 20], strides = [1, 1]} : vector<32x20xf32> to vector<2x20xf32>
    %c8 = arith.constant 8 : index
    %c0_34 = arith.constant 0 : index
    %c0_35 = arith.constant 0 : index
    %60 = vector.load %arg3[%c8, %c0_34, %c0_35] : memref<16x20x50xf32, #tpu.memory_space<vmem>>, vector<1x20x50xf32>
    %61 = vector.shape_cast %60 : vector<1x20x50xf32> to vector<20x50xf32>
    %cst_36 = arith.constant dense<0.000000e+00> : vector<2x50xf32>
    %62 = tpu.matmul %59, %61, %cst_36 {dimension_numbers = #tpu.dot_dimension_numbers<[1], [0], [0], [1], [0, 0, 1, 1], [], []>} : vector<2x20xf32>, vector<20x50xf32>, vector<2x50xf32> -> vector<2x50xf32>
    %63 = arith.addf %58, %62 : vector<2x50xf32>
    %64 = vector.extract_strided_slice %14 {offsets = [18, 0], sizes = [2, 20], strides = [1, 1]} : vector<32x20xf32> to vector<2x20xf32>
    %c9 = arith.constant 9 : index
    %c0_37 = arith.constant 0 : index
    %c0_38 = arith.constant 0 : index
    %65 = vector.load %arg3[%c9, %c0_37, %c0_38] : memref<16x20x50xf32, #tpu.memory_space<vmem>>, vector<1x20x50xf32>
    %66 = vector.shape_cast %65 : vector<1x20x50xf32> to vector<20x50xf32>
    %cst_39 = arith.constant dense<0.000000e+00> : vector<2x50xf32>
    %67 = tpu.matmul %64, %66, %cst_39 {dimension_numbers = #tpu.dot_dimension_numbers<[1], [0], [0], [1], [0, 0, 1, 1], [], []>} : vector<2x20xf32>, vector<20x50xf32>, vector<2x50xf32> -> vector<2x50xf32>
    %68 = arith.addf %63, %67 : vector<2x50xf32>
    %69 = vector.extract_strided_slice %14 {offsets = [20, 0], sizes = [2, 20], strides = [1, 1]} : vector<32x20xf32> to vector<2x20xf32>
    %c10 = arith.constant 10 : index
    %c0_40 = arith.constant 0 : index
    %c0_41 = arith.constant 0 : index
    %70 = vector.load %arg3[%c10, %c0_40, %c0_41] : memref<16x20x50xf32, #tpu.memory_space<vmem>>, vector<1x20x50xf32>
    %71 = vector.shape_cast %70 : vector<1x20x50xf32> to vector<20x50xf32>
    %cst_42 = arith.constant dense<0.000000e+00> : vector<2x50xf32>
    %72 = tpu.matmul %69, %71, %cst_42 {dimension_numbers = #tpu.dot_dimension_numbers<[1], [0], [0], [1], [0, 0, 1, 1], [], []>} : vector<2x20xf32>, vector<20x50xf32>, vector<2x50xf32> -> vector<2x50xf32>
    %73 = arith.addf %68, %72 : vector<2x50xf32>
    %74 = vector.extract_strided_slice %14 {offsets = [22, 0], sizes = [2, 20], strides = [1, 1]} : vector<32x20xf32> to vector<2x20xf32>
    %c11 = arith.constant 11 : index
    %c0_43 = arith.constant 0 : index
    %c0_44 = arith.constant 0 : index
    %75 = vector.load %arg3[%c11, %c0_43, %c0_44] : memref<16x20x50xf32, #tpu.memory_space<vmem>>, vector<1x20x50xf32>
    %76 = vector.shape_cast %75 : vector<1x20x50xf32> to vector<20x50xf32>
    %cst_45 = arith.constant dense<0.000000e+00> : vector<2x50xf32>
    %77 = tpu.matmul %74, %76, %cst_45 {dimension_numbers = #tpu.dot_dimension_numbers<[1], [0], [0], [1], [0, 0, 1, 1], [], []>} : vector<2x20xf32>, vector<20x50xf32>, vector<2x50xf32> -> vector<2x50xf32>
    %78 = arith.addf %73, %77 : vector<2x50xf32>
    %79 = vector.extract_strided_slice %14 {offsets = [24, 0], sizes = [2, 20], strides = [1, 1]} : vector<32x20xf32> to vector<2x20xf32>
    %c12 = arith.constant 12 : index
    %c0_46 = arith.constant 0 : index
    %c0_47 = arith.constant 0 : index
    %80 = vector.load %arg3[%c12, %c0_46, %c0_47] : memref<16x20x50xf32, #tpu.memory_space<vmem>>, vector<1x20x50xf32>
    %81 = vector.shape_cast %80 : vector<1x20x50xf32> to vector<20x50xf32>
    %cst_48 = arith.constant dense<0.000000e+00> : vector<2x50xf32>
    %82 = tpu.matmul %79, %81, %cst_48 {dimension_numbers = #tpu.dot_dimension_numbers<[1], [0], [0], [1], [0, 0, 1, 1], [], []>} : vector<2x20xf32>, vector<20x50xf32>, vector<2x50xf32> -> vector<2x50xf32>
    %83 = arith.addf %78, %82 : vector<2x50xf32>
    %84 = vector.extract_strided_slice %14 {offsets = [26, 0], sizes = [2, 20], strides = [1, 1]} : vector<32x20xf32> to vector<2x20xf32>
    %c13 = arith.constant 13 : index
    %c0_49 = arith.constant 0 : index
    %c0_50 = arith.constant 0 : index
    %85 = vector.load %arg3[%c13, %c0_49, %c0_50] : memref<16x20x50xf32, #tpu.memory_space<vmem>>, vector<1x20x50xf32>
    %86 = vector.shape_cast %85 : vector<1x20x50xf32> to vector<20x50xf32>
    %cst_51 = arith.constant dense<0.000000e+00> : vector<2x50xf32>
    %87 = tpu.matmul %84, %86, %cst_51 {dimension_numbers = #tpu.dot_dimension_numbers<[1], [0], [0], [1], [0, 0, 1, 1], [], []>} : vector<2x20xf32>, vector<20x50xf32>, vector<2x50xf32> -> vector<2x50xf32>
    %88 = arith.addf %83, %87 : vector<2x50xf32>
    %89 = vector.extract_strided_slice %14 {offsets = [28, 0], sizes = [2, 20], strides = [1, 1]} : vector<32x20xf32> to vector<2x20xf32>
    %c14 = arith.constant 14 : index
    %c0_52 = arith.constant 0 : index
    %c0_53 = arith.constant 0 : index
    %90 = vector.load %arg3[%c14, %c0_52, %c0_53] : memref<16x20x50xf32, #tpu.memory_space<vmem>>, vector<1x20x50xf32>
    %91 = vector.shape_cast %90 : vector<1x20x50xf32> to vector<20x50xf32>
    %cst_54 = arith.constant dense<0.000000e+00> : vector<2x50xf32>
    %92 = tpu.matmul %89, %91, %cst_54 {dimension_numbers = #tpu.dot_dimension_numbers<[1], [0], [0], [1], [0, 0, 1, 1], [], []>} : vector<2x20xf32>, vector<20x50xf32>, vector<2x50xf32> -> vector<2x50xf32>
    %93 = arith.addf %88, %92 : vector<2x50xf32>
    %94 = vector.extract_strided_slice %14 {offsets = [30, 0], sizes = [2, 20], strides = [1, 1]} : vector<32x20xf32> to vector<2x20xf32>
    %c15 = arith.constant 15 : index
    %c0_55 = arith.constant 0 : index
    %c0_56 = arith.constant 0 : index
    %95 = vector.load %arg3[%c15, %c0_55, %c0_56] : memref<16x20x50xf32, #tpu.memory_space<vmem>>, vector<1x20x50xf32>
    %96 = vector.shape_cast %95 : vector<1x20x50xf32> to vector<20x50xf32>
    %cst_57 = arith.constant dense<0.000000e+00> : vector<2x50xf32>
    %97 = tpu.matmul %94, %96, %cst_57 {dimension_numbers = #tpu.dot_dimension_numbers<[1], [0], [0], [1], [0, 0, 1, 1], [], []>} : vector<2x20xf32>, vector<20x50xf32>, vector<2x50xf32> -> vector<2x50xf32>
    %98 = arith.addf %93, %97 : vector<2x50xf32>
    %cst_58 = arith.constant 0.000000e+00 : f32
    %99 = vector.broadcast %cst_58 : f32 to vector<2x50xf32>
    %100 = arith.maximumf %98, %99 : vector<2x50xf32>
    %c0_59 = arith.constant 0 : index
    %c0_60 = arith.constant 0 : index
    %101 = vector.load %arg5[%c0_59, %c0_60] : memref<50x10xf32, #tpu.memory_space<vmem>>, vector<50x10xf32>
    %cst_61 = arith.constant dense<0.000000e+00> : vector<2x10xf32>
    %102 = tpu.matmul %100, %101, %cst_61 {dimension_numbers = #tpu.dot_dimension_numbers<[1], [0], [0], [1], [0, 0, 1, 1], [], []>} : vector<2x50xf32>, vector<50x10xf32>, vector<2x10xf32> -> vector<2x10xf32>
    %c0_62 = arith.constant 0 : index
    %c0_63 = arith.constant 0 : index
    %103 = vector.load %arg6[%c0_62, %c0_63] : memref<1x10xf32, #tpu.memory_space<vmem>>, vector<1x10xf32>
    %104 = vector.broadcast %103 : vector<1x10xf32> to vector<2x10xf32>
    %105 = arith.addf %102, %104 : vector<2x10xf32>
    %cst_64 = arith.constant dense<0xFF800000> : vector<2xf32>
    %106 = vector.multi_reduction <maximumf>, %105, %cst_64 [1] : vector<2x10xf32> to vector<2xf32>
    %107 = vector.shape_cast %106 : vector<2xf32> to vector<2x1xf32>
    %108 = vector.broadcast %107 : vector<2x1xf32> to vector<2x10xf32>
    %109 = arith.subf %105, %108 : vector<2x10xf32>
    %110 = math.exp %109 : vector<2x10xf32>
    %cst_65 = arith.constant dense<0.000000e+00> : vector<2xf32>
    %111 = vector.multi_reduction <add>, %110, %cst_65 [1] : vector<2x10xf32> to vector<2xf32>
    %112 = vector.shape_cast %111 : vector<2xf32> to vector<2x1xf32>
    %113 = math.log %112 : vector<2x1xf32>
    %114 = arith.addf %113, %107 : vector<2x1xf32>
    %115 = vector.broadcast %114 : vector<2x1xf32> to vector<2x10xf32>
    %116 = arith.subf %105, %115 : vector<2x10xf32>
    %c0_66 = arith.constant 0 : index
    %c0_67 = arith.constant 0 : index
    %117 = vector.load %arg7[%c0_66, %c0_67] : memref<2x10xf32, #tpu.memory_space<vmem>>, vector<2x10xf32>
    tpu.vector_store %arg7[%c0_66, %c0_67], %116 {strides = array<i32>} : memref<2x10xf32, #tpu.memory_space<vmem>>, vector<2x10xf32>,
    return
  }
}

</mosaic_0001>

<bundles_post_ra>
// kernel: net_forward.2
= control target key start
LH: loop header
LB: loop body
LE: loop exit
PB: predicated region body
PF: predicated region fallthrough
CT: control target
= control target key end

     0   :  { %vm595_vm0 = vcmask 1040384   ;;  %vm162_vm1 = vcmask 203776   ;;  %vm2145_vm2 = vmmov 1   ;;  %vm1571_vm4 = vcmask 80896   ;;  %s3155_s1 = inlined_call_operand.vmem [shape: f32[25,10], index: 1, kind: input, shape index: {}]   ;;  %s3156_s0 = inlined_call_operand.vmem [shape: f32[1152,25], index: 0, kind: input, shape index: {}]   ;;  %s3157_s2 = inlined_call_operand.vmem [shape: f32[1,10], index: 2, kind: input, shape index: {}]   ;;  %s3158_s3 = inlined_call_operand.vmem [shape: f32[288,10], index: 3, kind: output, shape index: {}]  }
   0x1   :  { %v158_v0 = vld [vmem:[%s3155_s1] sm:$0xff]  ;;  %v159_v1 = vld [vmem:[%s3155_s1 + $0x8] sm:$0xff]  ;;  %v160_v2 = vld [vmem:[%s3155_s1 + $0x10] sm:$0xff] }
   0x2   :  { %v2130_v3 = vpack.c.bf16 %v159_v1, %v158_v0  ;;  %v161_v4 = vld [vmem:[%s3155_s1 + $0x18] sm:$0x1]  ;;  %v14_v5 = vld [vmem:[%s3156_s0] sm:$0xff]  ;;  %vm2135_vm3 = vmpackc.low %vm595_vm0, %vm2145_vm2 }
   0x3   :  { %v2134_v6 = vpack.c.bf16 %v161_v4, %v160_v2  ;;  %1914 = vmatprep.mubr.msk.f32.mxu0 %vm162_vm1, %v14_v5  ;;  %v86_v7 = vld [vmem:[%s3156_s0 + $0x240] sm:$0xff]  ;;  %v15_v8 = vld [vmem:[%s3156_s0 + $0x8] sm:$0xff]  ;;  %v16_v10 = vld [vmem:[%s3156_s0 + $0x10] sm:$0xff] }
   0x4   :  { %2131 = vmatprep.subr.bf16.mxu0 %v2130_v3  ;;  %2140 = vmatprep.subr.bf16.mxu1 %v2130_v3  ;;  %v87_v9 = vld [vmem:[%s3156_s0 + $0x248] sm:$0xff]  ;;  %v88_v11 = vld [vmem:[%s3156_s0 + $0x250] sm:$0xff]  ;;  %v17_v12 = vld [vmem:[%s3156_s0 + $0x18] sm:$0xff] }
   0x5   :  { %2133 = vmatpush3.bf16.msra.mxu0 %v2130_v3  ;;  %2142 = vmatpush3.bf16.msra.mxu1 %v2130_v3  ;;  %v89_v13 = vld [vmem:[%s3156_s0 + $0x258] sm:$0xff]  ;;  %v18_v14 = vld [vmem:[%s3156_s0 + $0x20] sm:$0xff]  ;;  %v19_v16 = vld [vmem:[%s3156_s0 + $0x28] sm:$0xff] }
   0x6   :  { %2136 = vmatprep.subr.msk.bf16.mxu0 %vm2135_vm3, %v2134_v6  ;;  %2141 = vmatprep.subr.msk.bf16.mxu1 %vm2135_vm3, %v2134_v6  ;;  %v90_v15 = vld [vmem:[%s3156_s0 + $0x260] sm:$0xff]  ;;  %v91_v17 = vld [vmem:[%s3156_s0 + $0x268] sm:$0xff]  ;;  %v20_v18 = vld [vmem:[%s3156_s0 + $0x30] sm:$0xff] }
   0x7   :  { %2022 = vmatprep.mubr.msk.f32.mxu1 %vm162_vm1, %v86_v7  ;;  %v92_v19 = vld [vmem:[%s3156_s0 + $0x270] sm:$0xff]  ;;  %v21_v20 = vld [vmem:[%s3156_s0 + $0x38] sm:$0xff]  ;;  %v22_v22 = vld [vmem:[%s3156_s0 + $0x40] sm:$0xff] }
   0x8   :  { %v93_v21 = vld [vmem:[%s3156_s0 + $0x278] sm:$0xff]  ;;  %v94_v23 = vld [vmem:[%s3156_s0 + $0x280] sm:$0xff]  ;;  %v23_v24 = vld [vmem:[%s3156_s0 + $0x48] sm:$0xff] }
   0x9   :  { %2139 = vmatpush3.bf16.msk.msra.mxu0 %vm2135_vm3, %v2134_v6  ;;  %2143 = vmatpush3.bf16.msk.msra.mxu1 %vm2135_vm3, %v2134_v6  ;;  %v95_v25 = vld [vmem:[%s3156_s0 + $0x288] sm:$0xff]  ;;  %v24_v26 = vld [vmem:[%s3156_s0 + $0x50] sm:$0xff]  ;;  %v25_v28 = vld [vmem:[%s3156_s0 + $0x58] sm:$0xff] }
   0xa   :  { %v96_v27 = vld [vmem:[%s3156_s0 + $0x290] sm:$0xff]  ;;  %v97_v29 = vld [vmem:[%s3156_s0 + $0x298] sm:$0xff]  ;;  %v26_v30 = vld [vmem:[%s3156_s0 + $0x60] sm:$0xff] }
   0xb   :  { %v98_v31 = vld [vmem:[%s3156_s0 + $0x2a0] sm:$0xff]  ;;  %v27_v32 = vld [vmem:[%s3156_s0 + $0x68] sm:$0xff]  ;;  %v28_v34 = vld [vmem:[%s3156_s0 + $0x70] sm:$0xff] }
   0xc   :  { %1915 = vmatmul.mubr.msk.f32.vlgmr.msra.gmra.mrb[0].mxu0 %vm162_vm1, %v15_v8  ;;  %2023 = vmatmul.mubr.msk.f32.vlgmr.msra.gmra.mrb[0].mxu1 %vm162_vm1, %v87_v9  ;;  %v99_v33 = vld [vmem:[%s3156_s0 + $0x2a8] sm:$0xff]  ;;  %v100_v35 = vld [vmem:[%s3156_s0 + $0x2b0] sm:$0xff]  ;;  %v29_v36 = vld [vmem:[%s3156_s0 + $0x78] sm:$0xff] }
   0xd   :  { %1917 = vmatprep.mubr.msk.f32.mxu0 %vm162_vm1, %v16_v10  ;;  %2025 = vmatprep.mubr.msk.f32.mxu1 %vm162_vm1, %v88_v11  ;;  %v101_v37 = vld [vmem:[%s3156_s0 + $0x2b8] sm:$0xff]  ;;  %v30_v38 = vld [vmem:[%s3156_s0 + $0x80] sm:$0xff]  ;;  %v31_v40 = vld [vmem:[%s3156_s0 + $0x88] sm:$0xff] }
   0xe   :  { %v102_v39 = vld [vmem:[%s3156_s0 + $0x2c0] sm:$0xff]  ;;  %v103_v41 = vld [vmem:[%s3156_s0 + $0x2c8] sm:$0xff]  ;;  %v32_v42 = vld [vmem:[%s3156_s0 + $0x90] sm:$0xff] }
   0xf   :  { %v104_v43 = vld [vmem:[%s3156_s0 + $0x2d0] sm:$0xff]  ;;  %v33_v44 = vld [vmem:[%s3156_s0 + $0x98] sm:$0xff]  ;;  %v34_v46 = vld [vmem:[%s3156_s0 + $0xa0] sm:$0xff] }
  0x10   :  { %1918 = vmatmul.mubr.msk.f32.gmra.mrb[2].mxu0 %vm162_vm1, %v17_v12  ;;  %2026 = vmatmul.mubr.msk.f32.gmra.mrb[2].mxu1 %vm162_vm1, %v89_v13  ;;  %v105_v45 = vld [vmem:[%s3156_s0 + $0x2d8] sm:$0xff]  ;;  %v106_v47 = vld [vmem:[%s3156_s0 + $0x2e0] sm:$0xff]  ;;  %v35_v48 = vld [vmem:[%s3156_s0 + $0xa8] sm:$0xff] }
  0x11   :  { %1920 = vmatprep.mubr.msk.f32.mxu0 %vm162_vm1, %v18_v14  ;;  %2028 = vmatprep.mubr.msk.f32.mxu1 %vm162_vm1, %v90_v15  ;;  %v107_v49 = vld [vmem:[%s3156_s0 + $0x2e8] sm:$0xff]  ;;  %v36_v50 = vld [vmem:[%s3156_s0 + $0xb0] sm:$0xff]  ;;  %v37_v52 = vld [vmem:[%s3156_s0 + $0xb8] sm:$0xff] }
  0x12   :  { %v108_v51 = vld [vmem:[%s3156_s0 + $0x2f0] sm:$0xff]  ;;  %v109_v53 = vld [vmem:[%s3156_s0 + $0x2f8] sm:$0xff]  ;;  %v38_v54 = vld [vmem:[%s3156_s0 + $0xc0] sm:$0xff] }
  0x13   :  { %v110_v55 = vld [vmem:[%s3156_s0 + $0x300] sm:$0xff]  ;;  %v39_v56 = vld [vmem:[%s3156_s0 + $0xc8] sm:$0xff]  ;;  %v40_v58 = vld [vmem:[%s3156_s0 + $0xd0] sm:$0xff] }
  0x14   :  { %1921 = vmatmul.mubr.msk.f32.gmra.mrb[4].mxu0 %vm162_vm1, %v19_v16  ;;  %2029 = vmatmul.mubr.msk.f32.gmra.mrb[4].mxu1 %vm162_vm1, %v91_v17  ;;  %v111_v57 = vld [vmem:[%s3156_s0 + $0x308] sm:$0xff]  ;;  %v112_v59 = vld [vmem:[%s3156_s0 + $0x310] sm:$0xff]  ;;  %v41_v60 = vld [vmem:[%s3156_s0 + $0xd8] sm:$0xff] }
  0x15   :  { %1923 = vmatprep.mubr.msk.f32.mxu0 %vm162_vm1, %v20_v18  ;;  %2031 = vmatprep.mubr.msk.f32.mxu1 %vm162_vm1, %v92_v19  ;;  %v113_v61 = vld [vmem:[%s3156_s0 + $0x318] sm:$0xff]  ;;  %v42_v62 = vld [vmem:[%s3156_s0 + $0xe0] sm:$0xff]  ;;  %v43_v0 = vld [vmem:[%s3156_s0 + $0xe8] sm:$0xff] }
  0x16   :  { %v114_v63 = vld [vmem:[%s3156_s0 + $0x320] sm:$0xff]  ;;  %v115_v1 = vld [vmem:[%s3156_s0 + $0x328] sm:$0xff]  ;;  %v44_v2 = vld [vmem:[%s3156_s0 + $0xf0] sm:$0xff] }
  0x17   :  { %v116_v3 = vld [vmem:[%s3156_s0 + $0x330] sm:$0xff]  ;;  %v45_v4 = vld [vmem:[%s3156_s0 + $0xf8] sm:$0xff]  ;;  %v46_v6 = vld [vmem:[%s3156_s0 + $0x100] sm:$0xff] }
  0x18   :  { %1924 = vmatmul.mubr.msk.f32.gmra.mrb[6].mxu0 %vm162_vm1, %v21_v20  ;;  %2032 = vmatmul.mubr.msk.f32.gmra.mrb[6].mxu1 %vm162_vm1, %v93_v21  ;;  %v117_v5 = vld [vmem:[%s3156_s0 + $0x338] sm:$0xff]  ;;  %v118_v7 = vld [vmem:[%s3156_s0 + $0x340] sm:$0xff]  ;;  %v47_v8 = vld [vmem:[%s3156_s0 + $0x108] sm:$0xff] }
  0x19   :  { %1926 = vmatprep.mubr.msk.f32.mxu0 %vm162_vm1, %v22_v22  ;;  %2034 = vmatprep.mubr.msk.f32.mxu1 %vm162_vm1, %v94_v23  ;;  %v119_v9 = vld [vmem:[%s3156_s0 + $0x348] sm:$0xff]  ;;  %v48_v10 = vld [vmem:[%s3156_s0 + $0x110] sm:$0xff]  ;;  %v49_v12 = vld [vmem:[%s3156_s0 + $0x118] sm:$0xff] }
  0x1a   :  { %v120_v11 = vld [vmem:[%s3156_s0 + $0x350] sm:$0xff]  ;;  %v121_v13 = vld [vmem:[%s3156_s0 + $0x358] sm:$0xff]  ;;  %v50_v14 = vld [vmem:[%s3156_s0 + $0x120] sm:$0xff] }
  0x1b   :  { %v122_v15 = vld [vmem:[%s3156_s0 + $0x360] sm:$0xff]  ;;  %v51_v16 = vld [vmem:[%s3156_s0 + $0x128] sm:$0xff]  ;;  %v52_v18 = vld [vmem:[%s3156_s0 + $0x130] sm:$0xff] }
  0x1c   :  { %1927 = vmatmul.mubr.msk.f32.gmra.mrb[8].mxu0 %vm162_vm1, %v23_v24  ;;  %2035 = vmatmul.mubr.msk.f32.gmra.mrb[8].mxu1 %vm162_vm1, %v95_v25  ;;  %v123_v17 = vld [vmem:[%s3156_s0 + $0x368] sm:$0xff]  ;;  %v124_v19 = vld [vmem:[%s3156_s0 + $0x370] sm:$0xff]  ;;  %v53_v20 = vld [vmem:[%s3156_s0 + $0x138] sm:$0xff] }
  0x1d   :  { %1929 = vmatprep.mubr.msk.f32.mxu0 %vm162_vm1, %v24_v26  ;;  %2037 = vmatprep.mubr.msk.f32.mxu1 %vm162_vm1, %v96_v27  ;;  %v125_v21 = vld [vmem:[%s3156_s0 + $0x378] sm:$0xff]  ;;  %v54_v22 = vld [vmem:[%s3156_s0 + $0x140] sm:$0xff]  ;;  %v55_v24 = vld [vmem:[%s3156_s0 + $0x148] sm:$0xff] }
  0x1e   :  { %v126_v23 = vld [vmem:[%s3156_s0 + $0x380] sm:$0xff]  ;;  %v127_v25 = vld [vmem:[%s3156_s0 + $0x388] sm:$0xff]  ;;  %v56_v26 = vld [vmem:[%s3156_s0 + $0x150] sm:$0xff] }
  0x1f   :  { %v128_v27 = vld [vmem:[%s3156_s0 + $0x390] sm:$0xff] }
  0x20   :  { %1930 = vmatmul.mubr.msk.f32.gmra.mrb[10].mxu0 %vm162_vm1, %v25_v28  ;;  %2038 = vmatmul.mubr.msk.f32.gmra.mrb[10].mxu1 %vm162_vm1, %v97_v29  ;;  %v57_v28 = vld [vmem:[%s3156_s0 + $0x158] sm:$0xff] }
  0x21   :  { %1932 = vmatprep.mubr.msk.f32.mxu0 %vm162_vm1, %v26_v30  ;;  %2040 = vmatprep.mubr.msk.f32.mxu1 %vm162_vm1, %v98_v31  ;;  %v129_v29 = vld [vmem:[%s3156_s0 + $0x398] sm:$0xff]  ;;  %v58_v30 = vld [vmem:[%s3156_s0 + $0x160] sm:$0xff] }
  0x22   :  { %v130_v31 = vld [vmem:[%s3156_s0 + $0x3a0] sm:$0xff] }
  0x24   :  { %1933 = vmatmul.mubr.msk.f32.gmra.mrb[12].mxu0 %vm162_vm1, %v27_v32  ;;  %2041 = vmatmul.mubr.msk.f32.gmra.mrb[12].mxu1 %vm162_vm1, %v99_v33  ;;  %v59_v32 = vld [vmem:[%s3156_s0 + $0x168] sm:$0xff] }
  0x25   :  { %1935 = vmatprep.mubr.msk.f32.mxu0 %vm162_vm1, %v28_v34  ;;  %2043 = vmatprep.mubr.msk.f32.mxu1 %vm162_vm1, %v100_v35  ;;  %v131_v33 = vld [vmem:[%s3156_s0 + $0x3a8] sm:$0xff]  ;;  %v60_v34 = vld [vmem:[%s3156_s0 + $0x170] sm:$0xff] }
  0x26   :  { %v132_v35 = vld [vmem:[%s3156_s0 + $0x3b0] sm:$0xff] }
  0x28   :  { %1936 = vmatmul.mubr.msk.f32.gmra.mrb[14].mxu0 %vm162_vm1, %v29_v36  ;;  %2044 = vmatmul.mubr.msk.f32.gmra.mrb[14].mxu1 %vm162_vm1, %v101_v37  ;;  %v61_v36 = vld [vmem:[%s3156_s0 + $0x178] sm:$0xff] }
  0x29   :  { %1938 = vmatprep.mubr.msk.f32.mxu0 %vm162_vm1, %v30_v38  ;;  %2046 = vmatprep.mubr.msk.f32.mxu1 %vm162_vm1, %v102_v39  ;;  %v133_v37 = vld [vmem:[%s3156_s0 + $0x3b8] sm:$0xff]  ;;  %v62_v38 = vld [vmem:[%s3156_s0 + $0x180] sm:$0xff] }
  0x2a   :  { %v134_v39 = vld [vmem:[%s3156_s0 + $0x3c0] sm:$0xff] }
  0x2c   :  { %1939 = vmatmul.mubr.msk.f32.gmra.mrb[16].mxu0 %vm162_vm1, %v31_v40  ;;  %2047 = vmatmul.mubr.msk.f32.gmra.mrb[16].mxu1 %vm162_vm1, %v103_v41  ;;  %v63_v40 = vld [vmem:[%s3156_s0 + $0x188] sm:$0xff] }
  0x2d   :  { %1941 = vmatprep.mubr.msk.f32.mxu0 %vm162_vm1, %v32_v42  ;;  %2049 = vmatprep.mubr.msk.f32.mxu1 %vm162_vm1, %v104_v43  ;;  %v135_v41 = vld [vmem:[%s3156_s0 + $0x3c8] sm:$0xff]  ;;  %v64_v42 = vld [vmem:[%s3156_s0 + $0x190] sm:$0xff] }
  0x2e   :  { %v136_v43 = vld [vmem:[%s3156_s0 + $0x3d0] sm:$0xff] }
  0x30   :  { %1942 = vmatmul.mubr.msk.f32.gmra.mrb[18].mxu0 %vm162_vm1, %v33_v44  ;;  %2050 = vmatmul.mubr.msk.f32.gmra.mrb[18].mxu1 %vm162_vm1, %v105_v45  ;;  %v65_v44 = vld [vmem:[%s3156_s0 + $0x198] sm:$0xff] }
  0x31   :  { %1944 = vmatprep.mubr.msk.f32.mxu0 %vm162_vm1, %v34_v46  ;;  %2052 = vmatprep.mubr.msk.f32.mxu1 %vm162_vm1, %v106_v47  ;;  %v137_v45 = vld [vmem:[%s3156_s0 + $0x3d8] sm:$0xff]  ;;  %v66_v46 = vld [vmem:[%s3156_s0 + $0x1a0] sm:$0xff] }
  0x32   :  { %v138_v47 = vld [vmem:[%s3156_s0 + $0x3e0] sm:$0xff] }
  0x34   :  { %1945 = vmatmul.mubr.msk.f32.gmra.mrb[20].mxu0 %vm162_vm1, %v35_v48  ;;  %2053 = vmatmul.mubr.msk.f32.gmra.mrb[20].mxu1 %vm162_vm1, %v107_v49  ;;  %v67_v48 = vld [vmem:[%s3156_s0 + $0x1a8] sm:$0xff] }
  0x35   :  { %1947 = vmatprep.mubr.msk.f32.mxu0 %vm162_vm1, %v36_v50  ;;  %2055 = vmatprep.mubr.msk.f32.mxu1 %vm162_vm1, %v108_v51  ;;  %v139_v49 = vld [vmem:[%s3156_s0 + $0x3e8] sm:$0xff]  ;;  %v68_v50 = vld [vmem:[%s3156_s0 + $0x1b0] sm:$0xff] }
  0x36   :  { %v140_v51 = vld [vmem:[%s3156_s0 + $0x3f0] sm:$0xff] }
  0x38   :  { %1948 = vmatmul.mubr.msk.f32.gmra.mrb[22].mxu0 %vm162_vm1, %v37_v52  ;;  %2056 = vmatmul.mubr.msk.f32.gmra.mrb[22].mxu1 %vm162_vm1, %v109_v53  ;;  %v69_v52 = vld [vmem:[%s3156_s0 + $0x1b8] sm:$0xff] }
  0x39   :  { %1950 = vmatprep.mubr.msk.f32.mxu0 %vm162_vm1, %v38_v54  ;;  %2058 = vmatprep.mubr.msk.f32.mxu1 %vm162_vm1, %v110_v55  ;;  %v141_v53 = vld [vmem:[%s3156_s0 + $0x3f8] sm:$0xff]  ;;  %v70_v54 = vld [vmem:[%s3156_s0 + $0x1c0] sm:$0xff] }
  0x3a   :  { %v142_v55 = vld [vmem:[%s3156_s0 + $0x400] sm:$0xff] }
  0x3c   :  { %1951 = vmatmul.mubr.msk.f32.gmra.mrb[24].mxu0 %vm162_vm1, %v39_v56  ;;  %2059 = vmatmul.mubr.msk.f32.gmra.mrb[24].mxu1 %vm162_vm1, %v111_v57  ;;  %v71_v56 = vld [vmem:[%s3156_s0 + $0x1c8] sm:$0xff] }
  0x3d   :  { %1953 = vmatprep.mubr.msk.f32.mxu0 %vm162_vm1, %v40_v58  ;;  %2061 = vmatprep.mubr.msk.f32.mxu1 %vm162_vm1, %v112_v59  ;;  %v143_v57 = vld [vmem:[%s3156_s0 + $0x408] sm:$0xff]  ;;  %v72_v58 = vld [vmem:[%s3156_s0 + $0x1d0] sm:$0xff] }
  0x3e   :  { %v144_v59 = vld [vmem:[%s3156_s0 + $0x410] sm:$0xff] }
  0x40   :  { %1954 = vmatmul.mubr.msk.f32.gmra.mrb[26].mxu0 %vm162_vm1, %v41_v60  ;;  %2062 = vmatmul.mubr.msk.f32.gmra.mrb[26].mxu1 %vm162_vm1, %v113_v61  ;;  %v73_v60 = vld [vmem:[%s3156_s0 + $0x1d8] sm:$0xff] }
  0x41   :  { %1956 = vmatprep.mubr.msk.f32.mxu0 %vm162_vm1, %v42_v62  ;;  %2064 = vmatprep.mubr.msk.f32.mxu1 %vm162_vm1, %v114_v63  ;;  %v145_v61 = vld [vmem:[%s3156_s0 + $0x418] sm:$0xff]  ;;  %v74_v62 = vld [vmem:[%s3156_s0 + $0x1e0] sm:$0xff] }
  0x42   :  { %v146_v63 = vld [vmem:[%s3156_s0 + $0x420] sm:$0xff] }
  0x44   :  { %1957 = vmatmul.mubr.msk.f32.gmra.mrb[28].mxu0 %vm162_vm1, %v43_v0  ;;  %2065 = vmatmul.mubr.msk.f32.gmra.mrb[28].mxu1 %vm162_vm1, %v115_v1  ;;  %v75_v0 = vld [vmem:[%s3156_s0 + $0x1e8] sm:$0xff] }
  0x45   :  { %1959 = vmatprep.mubr.msk.f32.mxu0 %vm162_vm1, %v44_v2  ;;  %2067 = vmatprep.mubr.msk.f32.mxu1 %vm162_vm1, %v116_v3  ;;  %v147_v1 = vld [vmem:[%s3156_s0 + $0x428] sm:$0xff]  ;;  %v76_v2 = vld [vmem:[%s3156_s0 + $0x1f0] sm:$0xff] }
  0x46   :  { %v148_v3 = vld [vmem:[%s3156_s0 + $0x430] sm:$0xff] }
  0x48   :  { %1960 = vmatmul.mubr.msk.f32.gmra.mrb[30].mxu0 %vm162_vm1, %v45_v4  ;;  %2068 = vmatmul.mubr.msk.f32.gmra.mrb[30].mxu1 %vm162_vm1, %v117_v5  ;;  %v77_v4 = vld [vmem:[%s3156_s0 + $0x1f8] sm:$0xff] }
  0x49   :  { %1962 = vmatprep.mubr.msk.f32.mxu0 %vm162_vm1, %v46_v6  ;;  %2070 = vmatprep.mubr.msk.f32.mxu1 %vm162_vm1, %v118_v7  ;;  %v149_v5 = vld [vmem:[%s3156_s0 + $0x438] sm:$0xff]  ;;  %v78_v6 = vld [vmem:[%s3156_s0 + $0x200] sm:$0xff] }
  0x4a   :  { %v150_v7 = vld [vmem:[%s3156_s0 + $0x440] sm:$0xff] }
  0x4c   :  { %1963 = vmatmul.mubr.msk.f32.gmra.mrb[32].mxu0 %vm162_vm1, %v47_v8  ;;  %2071 = vmatmul.mubr.msk.f32.gmra.mrb[32].mxu1 %vm162_vm1, %v119_v9  ;;  %v79_v8 = vld [vmem:[%s3156_s0 + $0x208] sm:$0xff] }
  0x4d   :  { %1965 = vmatprep.mubr.msk.f32.mxu0 %vm162_vm1, %v48_v10  ;;  %2073 = vmatprep.mubr.msk.f32.mxu1 %vm162_vm1, %v120_v11  ;;  %v151_v9 = vld [vmem:[%s3156_s0 + $0x448] sm:$0xff]  ;;  %v80_v10 = vld [vmem:[%s3156_s0 + $0x210] sm:$0xff] }
  0x4e   :  { %v152_v11 = vld [vmem:[%s3156_s0 + $0x450] sm:$0xff] }
  0x50   :  { %1966 = vmatmul.mubr.msk.f32.gmra.mrb[34].mxu0 %vm162_vm1, %v49_v12  ;;  %2074 = vmatmul.mubr.msk.f32.gmra.mrb[34].mxu1 %vm162_vm1, %v121_v13  ;;  %v81_v12 = vld [vmem:[%s3156_s0 + $0x218] sm:$0xff] }
  0x51   :  { %1968 = vmatprep.mubr.msk.f32.mxu0 %vm162_vm1, %v50_v14  ;;  %2076 = vmatprep.mubr.msk.f32.mxu1 %vm162_vm1, %v122_v15  ;;  %v153_v13 = vld [vmem:[%s3156_s0 + $0x458] sm:$0xff]  ;;  %v82_v14 = vld [vmem:[%s3156_s0 + $0x220] sm:$0xff] }
  0x52   :  { %v154_v15 = vld [vmem:[%s3156_s0 + $0x460] sm:$0xff] }
  0x54   :  { %1969 = vmatmul.mubr.msk.f32.gmra.mrb[36].mxu0 %vm162_vm1, %v51_v16  ;;  %2077 = vmatmul.mubr.msk.f32.gmra.mrb[36].mxu1 %vm162_vm1, %v123_v17  ;;  %v83_v16 = vld [vmem:[%s3156_s0 + $0x228] sm:$0xff] }
  0x55   :  { %1971 = vmatprep.mubr.msk.f32.mxu0 %vm162_vm1, %v52_v18  ;;  %2079 = vmatprep.mubr.msk.f32.mxu1 %vm162_vm1, %v124_v19  ;;  %v155_v17 = vld [vmem:[%s3156_s0 + $0x468] sm:$0xff]  ;;  %v84_v18 = vld [vmem:[%s3156_s0 + $0x230] sm:$0xff] }
  0x56   :  { %v156_v19 = vld [vmem:[%s3156_s0 + $0x470] sm:$0xff] }
  0x58   :  { %1972 = vmatmul.mubr.msk.f32.gmra.mrb[38].mxu0 %vm162_vm1, %v53_v20  ;;  %2080 = vmatmul.mubr.msk.f32.gmra.mrb[38].mxu1 %vm162_vm1, %v125_v21  ;;  %v85_v20 = vld [vmem:[%s3156_s0 + $0x238] sm:$0xff] }
  0x59   :  { %1974 = vmatprep.mubr.msk.f32.mxu0 %vm162_vm1, %v54_v22  ;;  %2082 = vmatprep.mubr.msk.f32.mxu1 %vm162_vm1, %v126_v23  ;;  %v157_v21 = vld [vmem:[%s3156_s0 + $0x478] sm:$0xff] }
  0x5c   :  { %1975 = vmatmul.mubr.msk.f32.gmra.mrb[40].mxu0 %vm162_vm1, %v55_v24  ;;  %2083 = vmatmul.mubr.msk.f32.gmra.mrb[40].mxu1 %vm162_vm1, %v127_v25 }
  0x5d   :  { %1977 = vmatprep.mubr.msk.f32.mxu0 %vm162_vm1, %v56_v26  ;;  %2085 = vmatprep.mubr.msk.f32.mxu1 %vm162_vm1, %v128_v27 }
  0x60   :  { %1978 = vmatmul.mubr.msk.f32.gmra.mrb[42].mxu0 %vm162_vm1, %v57_v28  ;;  %2086 = vmatmul.mubr.msk.f32.gmra.mrb[42].mxu1 %vm162_vm1, %v129_v29 }
  0x61   :  { %1980 = vmatprep.mubr.msk.f32.mxu0 %vm162_vm1, %v58_v30  ;;  %2088 = vmatprep.mubr.msk.f32.mxu1 %vm162_vm1, %v130_v31 }
  0x64   :  { %1981 = vmatmul.mubr.msk.f32.gmra.mrb[44].mxu0 %vm162_vm1, %v59_v32  ;;  %2089 = vmatmul.mubr.msk.f32.gmra.mrb[44].mxu1 %vm162_vm1, %v131_v33 }
  0x65   :  { %1983 = vmatprep.mubr.msk.f32.mxu0 %vm162_vm1, %v60_v34  ;;  %2091 = vmatprep.mubr.msk.f32.mxu1 %vm162_vm1, %v132_v35 }
  0x68   :  { %1984 = vmatmul.mubr.msk.f32.gmra.mrb[46].mxu0 %vm162_vm1, %v61_v36  ;;  %2092 = vmatmul.mubr.msk.f32.gmra.mrb[46].mxu1 %vm162_vm1, %v133_v37 }
  0x69   :  { %1986 = vmatprep.mubr.msk.f32.mxu0 %vm162_vm1, %v62_v38  ;;  %2094 = vmatprep.mubr.msk.f32.mxu1 %vm162_vm1, %v134_v39 }
  0x6c   :  { %1987 = vmatmul.mubr.msk.f32.gmra.mrb[48].mxu0 %vm162_vm1, %v63_v40  ;;  %2095 = vmatmul.mubr.msk.f32.gmra.mrb[48].mxu1 %vm162_vm1, %v135_v41 }
  0x6d   :  { %1989 = vmatprep.mubr.msk.f32.mxu0 %vm162_vm1, %v64_v42  ;;  %2097 = vmatprep.mubr.msk.f32.mxu1 %vm162_vm1, %v136_v43 }
  0x70   :  { %1990 = vmatmul.mubr.msk.f32.gmra.mrb[50].mxu0 %vm162_vm1, %v65_v44  ;;  %2098 = vmatmul.mubr.msk.f32.gmra.mrb[50].mxu1 %vm162_vm1, %v137_v45 }
  0x71   :  { %1992 = vmatprep.mubr.msk.f32.mxu0 %vm162_vm1, %v66_v46  ;;  %2100 = vmatprep.mubr.msk.f32.mxu1 %vm162_vm1, %v138_v47 }
  0x74   :  { %1993 = vmatmul.mubr.msk.f32.gmra.mrb[52].mxu0 %vm162_vm1, %v67_v48  ;;  %2101 = vmatmul.mubr.msk.f32.gmra.mrb[52].mxu1 %vm162_vm1, %v139_v49 }
  0x75   :  { %1995 = vmatprep.mubr.msk.f32.mxu0 %vm162_vm1, %v68_v50  ;;  %2103 = vmatprep.mubr.msk.f32.mxu1 %vm162_vm1, %v140_v51 }
  0x78   :  { %1996 = vmatmul.mubr.msk.f32.gmra.mrb[54].mxu0 %vm162_vm1, %v69_v52  ;;  %2104 = vmatmul.mubr.msk.f32.gmra.mrb[54].mxu1 %vm162_vm1, %v141_v53 }
  0x79   :  { %1998 = vmatprep.mubr.msk.f32.mxu0 %vm162_vm1, %v70_v54  ;;  %2106 = vmatprep.mubr.msk.f32.mxu1 %vm162_vm1, %v142_v55 }
  0x7c   :  { %1999 = vmatmul.mubr.msk.f32.gmra.mrb[56].mxu0 %vm162_vm1, %v71_v56  ;;  %2107 = vmatmul.mubr.msk.f32.gmra.mrb[56].mxu1 %vm162_vm1, %v143_v57 }
  0x7d   :  { %2001 = vmatprep.mubr.msk.f32.mxu0 %vm162_vm1, %v72_v58  ;;  %2109 = vmatprep.mubr.msk.f32.mxu1 %vm162_vm1, %v144_v59 }
  0x80   :  { %2002 = vmatmul.mubr.msk.f32.gmra.mrb[58].mxu0 %vm162_vm1, %v73_v60  ;;  %2110 = vmatmul.mubr.msk.f32.gmra.mrb[58].mxu1 %vm162_vm1, %v145_v61 }
  0x81   :  { %2004 = vmatprep.mubr.msk.f32.mxu0 %vm162_vm1, %v74_v62  ;;  %2112 = vmatprep.mubr.msk.f32.mxu1 %vm162_vm1, %v146_v63 }
  0x84   :  { %2005 = vmatmul.mubr.msk.f32.gmra.mrb[60].mxu0 %vm162_vm1, %v75_v0  ;;  %2113 = vmatmul.mubr.msk.f32.gmra.mrb[60].mxu1 %vm162_vm1, %v147_v1 }
  0x85   :  { %2007 = vmatprep.mubr.msk.f32.mxu0 %vm162_vm1, %v76_v2  ;;  %2115 = vmatprep.mubr.msk.f32.mxu1 %vm162_vm1, %v148_v3 }
  0x88   :  { %2008 = vmatmul.mubr.msk.f32.gmra.mrb[62].mxu0 %vm162_vm1, %v77_v4  ;;  %2116 = vmatmul.mubr.msk.f32.gmra.mrb[62].mxu1 %vm162_vm1, %v149_v5 }
  0x89   :  { %2010 = vmatprep.mubr.msk.f32.mxu0 %vm162_vm1, %v78_v6  ;;  %2118 = vmatprep.mubr.msk.f32.mxu1 %vm162_vm1, %v150_v7 }
  0x8c   :  { %2011 = vmatmul.mubr.msk.f32.gmra.mrb[64].mxu0 %vm162_vm1, %v79_v8  ;;  %2119 = vmatmul.mubr.msk.f32.gmra.mrb[64].mxu1 %vm162_vm1, %v151_v9 }
  0x8d   :  { %2013 = vmatprep.mubr.msk.f32.mxu0 %vm162_vm1, %v80_v10  ;;  %2121 = vmatprep.mubr.msk.f32.mxu1 %vm162_vm1, %v152_v11 }
  0x90   :  { %2014 = vmatmul.mubr.msk.f32.gmra.mrb[66].mxu0 %vm162_vm1, %v81_v12  ;;  %2122 = vmatmul.mubr.msk.f32.gmra.mrb[66].mxu1 %vm162_vm1, %v153_v13 }
  0x91   :  { %2016 = vmatprep.mubr.msk.f32.mxu0 %vm162_vm1, %v82_v14  ;;  %2124 = vmatprep.mubr.msk.f32.mxu1 %vm162_vm1, %v154_v15 }
  0x94   :  { %2017 = vmatmul.mubr.msk.f32.gmra.mrb[68].mxu0 %vm162_vm1, %v83_v16  ;;  %2125 = vmatmul.mubr.msk.f32.gmra.mrb[68].mxu1 %vm162_vm1, %v155_v17 }
  0x95   :  { %2019 = vmatprep.mubr.msk.f32.mxu0 %vm162_vm1, %v84_v18  ;;  %2127 = vmatprep.mubr.msk.f32.mxu1 %vm162_vm1, %v156_v19 }
  0x98   :  { %2020 = vmatmul.mubr.msk.f32.gmra.mrb[70].mxu0 %vm162_vm1, %v85_v20  ;;  %2128 = vmatmul.mubr.msk.f32.gmra.mrb[70].mxu1 %vm162_vm1, %v157_v21 }
  0xdf   :  { %v2754_v22 = vpop.f32.mrb[0].mxu0  ;;  %v2756_v23 = vpop.f32.mrb[0].mxu1 }
  0xe0   :  { %v2758_v24 = vpop.f32.mrb[1].mxu0  ;;  %v2760_v25 = vpop.f32.mrb[1].mxu1 }
  0xe3   :  { %v2762_v26 = vpop.f32.mrb[2].mxu0  ;;  %v2764_v27 = vpop.f32.mrb[2].mxu1 }
  0xe4   :  { %v2766_v28 = vpop.f32.mrb[3].mxu0  ;;  %v2768_v29 = vpop.f32.mrb[3].mxu1 }
  0xe7   :  { %v2770_v30 = vpop.f32.mrb[4].mxu0  ;;  %v2772_v31 = vpop.f32.mrb[4].mxu1 }
  0xe8   :  { %v2774_v32 = vpop.f32.mrb[5].mxu0  ;;  %v2776_v33 = vpop.f32.mrb[5].mxu1 }
  0xeb   :  { %v2778_v34 = vpop.f32.mrb[6].mxu0  ;;  %v2780_v35 = vpop.f32.mrb[6].mxu1 }
  0xec   :  { %v2782_v36 = vpop.f32.mrb[7].mxu0  ;;  %v2784_v37 = vpop.f32.mrb[7].mxu1 }
  0xef   :  { %v2786_v38 = vpop.f32.mrb[8].mxu0  ;;  %v2788_v39 = vpop.f32.mrb[8].mxu1 }
  0xf0   :  { %v2790_v40 = vpop.f32.mrb[9].mxu0  ;;  %v2792_v41 = vpop.f32.mrb[9].mxu1 }
  0xf3   :  { %v2794_v42 = vpop.f32.mrb[10].mxu0  ;;  %v2796_v43 = vpop.f32.mrb[10].mxu1 }
  0xf4   :  { %v2798_v44 = vpop.f32.mrb[11].mxu0  ;;  %v2800_v45 = vpop.f32.mrb[11].mxu1 }
  0xf7   :  { %v2802_v46 = vpop.f32.mrb[12].mxu0  ;;  %v2804_v47 = vpop.f32.mrb[12].mxu1 }
  0xf8   :  { %v2806_v48 = vpop.f32.mrb[13].mxu0  ;;  %v2808_v49 = vpop.f32.mrb[13].mxu1 }
  0xfb   :  { %v2810_v50 = vpop.f32.mrb[14].mxu0  ;;  %v2812_v51 = vpop.f32.mrb[14].mxu1 }
  0xfc   :  { %v2814_v52 = vpop.f32.mrb[15].mxu0  ;;  %v2816_v53 = vpop.f32.mrb[15].mxu1 }
  0xff   :  { %v2818_v54 = vpop.f32.mrb[16].mxu0  ;;  %v2820_v55 = vpop.f32.mrb[16].mxu1 }
 0x100   :  { %v2822_v56 = vpop.f32.mrb[17].mxu0  ;;  %v2824_v57 = vpop.f32.mrb[17].mxu1 }
 0x103   :  { %v2826_v58 = vpop.f32.mrb[18].mxu0  ;;  %v2828_v59 = vpop.f32.mrb[18].mxu1 }
 0x104   :  { %v2830_v60 = vpop.f32.mrb[19].mxu0  ;;  %v2832_v61 = vpop.f32.mrb[19].mxu1 }
 0x107   :  { %v2834_v62 = vpop.f32.mrb[20].mxu0  ;;  %v2836_v63 = vpop.f32.mrb[20].mxu1 }
 0x108   :  { %v2838_v0 = vpop.f32.mrb[21].mxu0  ;;  %v2840_v1 = vpop.f32.mrb[21].mxu1 }
 0x10b   :  { %v2842_v2 = vpop.f32.mrb[22].mxu0  ;;  %v2844_v3 = vpop.f32.mrb[22].mxu1 }
 0x10c   :  { %v2846_v4 = vpop.f32.mrb[23].mxu0  ;;  %v2848_v5 = vpop.f32.mrb[23].mxu1 }
 0x10f   :  { %v2850_v6 = vpop.f32.mrb[24].mxu0  ;;  %v2852_v7 = vpop.f32.mrb[24].mxu1 }
 0x110   :  { %3159 = vst [vmem:[#allocation2_spill] sm:$0xff] %v2850_v6  ;;  %3160 = vst [vmem:[#allocation3_spill] sm:$0xff] %v2852_v7  ;;  %v2854_v8 = vpop.f32.mrb[25].mxu0  ;;  %v2856_v9 = vpop.f32.mrb[25].mxu1 }
 0x111   :  { %3161 = vst [vmem:[#allocation4_spill] sm:$0xff] %v2854_v8  ;;  %3162 = vst [vmem:[#allocation5_spill] sm:$0xff] %v2856_v9 }
 0x113   :  { %v2858_v10 = vpop.f32.mrb[26].mxu0  ;;  %v2860_v11 = vpop.f32.mrb[26].mxu1 }
 0x114   :  { %3163 = vst [vmem:[#allocation6_spill] sm:$0xff] %v2858_v10  ;;  %3164 = vst [vmem:[#allocation7_spill] sm:$0xff] %v2860_v11  ;;  %v2862_v12 = vpop.f32.mrb[27].mxu0  ;;  %v2864_v13 = vpop.f32.mrb[27].mxu1 }
 0x115   :  { %3165 = vst [vmem:[#allocation8_spill] sm:$0xff] %v2862_v12  ;;  %3166 = vst [vmem:[#allocation9_spill] sm:$0xff] %v2864_v13 }
 0x117   :  { %v2866_v14 = vpop.f32.mrb[28].mxu0  ;;  %v2868_v15 = vpop.f32.mrb[28].mxu1 }
 0x118   :  { %3167 = vst [vmem:[#allocation10_spill] sm:$0xff] %v2866_v14  ;;  %3168 = vst [vmem:[#allocation11_spill] sm:$0xff] %v2868_v15  ;;  %v2870_v16 = vpop.f32.mrb[29].mxu0  ;;  %v2872_v17 = vpop.f32.mrb[29].mxu1 }
 0x119   :  { %3169 = vst [vmem:[#allocation12_spill] sm:$0xff] %v2870_v16  ;;  %3170 = vst [vmem:[#allocation13_spill] sm:$0xff] %v2872_v17 }
 0x11b   :  { %v2874_v18 = vpop.f32.mrb[30].mxu0  ;;  %v2876_v19 = vpop.f32.mrb[30].mxu1 }
 0x11c   :  { %3171 = vst [vmem:[#allocation14_spill] sm:$0xff] %v2874_v18  ;;  %3172 = vst [vmem:[#allocation15_spill] sm:$0xff] %v2876_v19  ;;  %v2878_v20 = vpop.f32.mrb[31].mxu0  ;;  %v2880_v21 = vpop.f32.mrb[31].mxu1 }
 0x11d   :  { %3173 = vst [vmem:[#allocation16_spill] sm:$0xff] %v2878_v20  ;;  %3174 = vst [vmem:[#allocation17_spill] sm:$0xff] %v2880_v21 }
 0x11f   :  { %v2882_v11 = vpop.f32.mrb[32].mxu0  ;;  %v2884_v12 = vpop.f32.mrb[32].mxu1 }
 0x120   :  { %3175 = vst [vmem:[#allocation18_spill] sm:$0xff] %v2882_v11  ;;  %3176 = vst [vmem:[#allocation19_spill] sm:$0xff] %v2884_v12  ;;  %v2886_v13 = vpop.f32.mrb[33].mxu0  ;;  %v2888_v14 = vpop.f32.mrb[33].mxu1 }
 0x121   :  { %3177 = vst [vmem:[#allocation20_spill] sm:$0xff] %v2886_v13  ;;  %3178 = vst [vmem:[#allocation21_spill] sm:$0xff] %v2888_v14  ;;  %v2903_v14 = vld [vmem:[%s3157_s2] ss:$0 sm:$0xff] }
 0x123   :  { %v2890_v15 = vpop.f32.mrb[34].mxu0  ;;  %v2892_v16 = vpop.f32.mrb[34].mxu1 }
 0x124   :  { %3179 = vst [vmem:[#allocation22_spill] sm:$0xff] %v2890_v15  ;;  %3180 = vst [vmem:[#allocation23_spill] sm:$0xff] %v2892_v16  ;;  %v2894_v17 = vpop.f32.mrb[35].mxu0  ;;  %v2896_v18 = vpop.f32.mrb[35].mxu1 }
 0x125   :  { %3181 = vst [vmem:[#allocation24_spill] sm:$0xff] %v2894_v17  ;;  %3182 = vst [vmem:[#allocation25_spill] sm:$0xff] %v2896_v18 }
 0x127   :  { %v1970_v19 = vpop.f32.mrb[36].mxu0  ;;  %v2078_v20 = vpop.f32.mrb[36].mxu1 }
 0x128   :  { %v1385_v21 = vmax.f32 %v2754_v22, %v1970_v19  ;;  %v1421_v11 = vmax.f32 %v2756_v23, %v2078_v20  ;;  %v845_v10 = vpop.f32.mrb[37].mxu0  ;;  %v1205_v12 = vpop.f32.mrb[37].mxu1 }
 0x129   :  { %v1384_v15 = vmax.f32 %v2758_v24, %v845_v10  ;;  %v1420_v16 = vmax.f32 %v2760_v25, %v1205_v12 }
 0x12a   :  { %v1457_v17 = vmax.f32 %v1385_v21, %v1421_v11 }
 0x12b   :  { %v1456_v13 = vmax.f32 %v1384_v15, %v1420_v16  ;;  %v1973_v18 = vpop.f32.mrb[38].mxu0  ;;  %v2081_v9 = vpop.f32.mrb[38].mxu1 }
 0x12c   :  { %v1500_v8 = vadd.f32 %v2903_v14, %v1457_v17  ;;  %v1387_v22 = vmax.f32 %v2762_v26, %v1973_v18  ;;  %v1423_v23 = vmax.f32 %v2764_v27, %v2081_v9  ;;  %v855_v19 = vpop.f32.mrb[39].mxu0  ;;  %v1215_v20 = vpop.f32.mrb[39].mxu1 }
 0x12d   :  { %v1499_v7 = vadd.f32 %v2903_v14, %v1456_v13  ;;  %v1386_v6 = vmax.f32 %v2766_v28, %v855_v19  ;;  %v1422_v24 = vmax.f32 %v2768_v29, %v1215_v20 }
 0x12e   :  { %v1536_v25 = vmax.f32 %v1500_v8, 0.0  ;;  %v1459_v10 = vmax.f32 %v1387_v22, %v1423_v23 }
 0x12f   :  { %v1535_v11 = vmax.f32 %v1499_v7, 0.0  ;;  %v1458_v12 = vmax.f32 %v1386_v6, %v1422_v24  ;;  %v1976_v15 = vpop.f32.mrb[40].mxu0  ;;  %v2084_v16 = vpop.f32.mrb[40].mxu1 }
 0x130   :  { %1573 = vst.msk [vmem:[%s3158_s3 + $0x8] sm:$0xff] %vm1571_vm4, %v1536_v25  ;;  %v1502_v26 = vadd.f32 %v2903_v14, %v1459_v10  ;;  %v1389_v27 = vmax.f32 %v2770_v30, %v1976_v15  ;;  %v1425_v9 = vmax.f32 %v2772_v31, %v2084_v16  ;;  %v865_v28 = vpop.f32.mrb[41].mxu0  ;;  %v1225_v13 = vpop.f32.mrb[41].mxu1 }
 0x131   :  { %1572 = vst.msk [vmem:[%s3158_s3] sm:$0xff] %vm1571_vm4, %v1535_v11  ;;  %v1501_v29 = vadd.f32 %v2903_v14, %v1458_v12  ;;  %v1388_v6 = vmax.f32 %v2774_v32, %v865_v28  ;;  %v1424_v7 = vmax.f32 %v2776_v33, %v1225_v13 }
 0x132   :  { %v1538_v8 = vmax.f32 %v1502_v26, 0.0  ;;  %v1461_v17 = vmax.f32 %v1389_v27, %v1425_v9 }
 0x133   :  { %v1537_v18 = vmax.f32 %v1501_v29, 0.0  ;;  %v1460_v21 = vmax.f32 %v1388_v6, %v1424_v7  ;;  %v1979_v30 = vpop.f32.mrb[42].mxu0  ;;  %v2087_v22 = vpop.f32.mrb[42].mxu1 }
 0x134   :  { %1575 = vst.msk [vmem:[%s3158_s3 + $0x18] sm:$0xff] %vm1571_vm4, %v1538_v8  ;;  %v1504_v31 = vadd.f32 %v2903_v14, %v1461_v17  ;;  %v1391_v23 = vmax.f32 %v2778_v34, %v1979_v30  ;;  %v1427_v19 = vmax.f32 %v2780_v35, %v2087_v22  ;;  %v875_v32 = vpop.f32.mrb[43].mxu0  ;;  %v1235_v20 = vpop.f32.mrb[43].mxu1 }
 0x135   :  { %1574 = vst.msk [vmem:[%s3158_s3 + $0x10] sm:$0xff] %vm1571_vm4, %v1537_v18  ;;  %v1503_v33 = vadd.f32 %v2903_v14, %v1460_v21  ;;  %v1390_v24 = vmax.f32 %v2782_v36, %v875_v32  ;;  %v1426_v25 = vmax.f32 %v2784_v37, %v1235_v20 }
 0x136   :  { %v1540_v10 = vmax.f32 %v1504_v31, 0.0  ;;  %v1463_v11 = vmax.f32 %v1391_v23, %v1427_v19 }
 0x137   :  { %v1539_v12 = vmax.f32 %v1503_v33, 0.0  ;;  %v1462_v15 = vmax.f32 %v1390_v24, %v1426_v25  ;;  %v1982_v34 = vpop.f32.mrb[44].mxu0  ;;  %v2090_v16 = vpop.f32.mrb[44].mxu1 }
 0x138   :  { %1577 = vst.msk [vmem:[%s3158_s3 + $0x28] sm:$0xff] %vm1571_vm4, %v1540_v10  ;;  %v1506_v35 = vadd.f32 %v2903_v14, %v1463_v11  ;;  %v1393_v26 = vmax.f32 %v2786_v38, %v1982_v34  ;;  %v1429_v27 = vmax.f32 %v2788_v39, %v2090_v16  ;;  %v885_v36 = vpop.f32.mrb[45].mxu0  ;;  %v1245_v9 = vpop.f32.mrb[45].mxu1 }
 0x139   :  { %1576 = vst.msk [vmem:[%s3158_s3 + $0x20] sm:$0xff] %vm1571_vm4, %v1539_v12  ;;  %v1505_v37 = vadd.f32 %v2903_v14, %v1462_v15  ;;  %v1392_v28 = vmax.f32 %v2790_v40, %v885_v36  ;;  %v1428_v13 = vmax.f32 %v2792_v41, %v1245_v9 }
 0x13a   :  { %v1542_v29 = vmax.f32 %v1506_v35, 0.0  ;;  %v1465_v6 = vmax.f32 %v1393_v26, %v1429_v27 }
 0x13b   :  { %v1541_v7 = vmax.f32 %v1505_v37, 0.0  ;;  %v1464_v8 = vmax.f32 %v1392_v28, %v1428_v13  ;;  %v1985_v38 = vpop.f32.mrb[46].mxu0  ;;  %v2093_v17 = vpop.f32.mrb[46].mxu1 }
 0x13c   :  { %1579 = vst.msk [vmem:[%s3158_s3 + $0x38] sm:$0xff] %vm1571_vm4, %v1542_v29  ;;  %v1508_v39 = vadd.f32 %v2903_v14, %v1465_v6  ;;  %v1395_v18 = vmax.f32 %v2794_v42, %v1985_v38  ;;  %v1431_v21 = vmax.f32 %v2796_v43, %v2093_v17  ;;  %v895_v40 = vpop.f32.mrb[47].mxu0  ;;  %v1255_v30 = vpop.f32.mrb[47].mxu1 }
 0x13d   :  { %1578 = vst.msk [vmem:[%s3158_s3 + $0x30] sm:$0xff] %vm1571_vm4, %v1541_v7  ;;  %v1507_v41 = vadd.f32 %v2903_v14, %v1464_v8  ;;  %v1394_v22 = vmax.f32 %v2798_v44, %v895_v40  ;;  %v1430_v31 = vmax.f32 %v2800_v45, %v1255_v30 }
 0x13e   :  { %v1544_v23 = vmax.f32 %v1508_v39, 0.0  ;;  %v1467_v19 = vmax.f32 %v1395_v18, %v1431_v21 }
 0x13f   :  { %v1543_v32 = vmax.f32 %v1507_v41, 0.0  ;;  %v1466_v20 = vmax.f32 %v1394_v22, %v1430_v31  ;;  %v1988_v42 = vpop.f32.mrb[48].mxu0  ;;  %v2096_v33 = vpop.f32.mrb[48].mxu1 }
 0x140   :  { %1581 = vst.msk [vmem:[%s3158_s3 + $0x48] sm:$0xff] %vm1571_vm4, %v1544_v23  ;;  %v1510_v43 = vadd.f32 %v2903_v14, %v1467_v19  ;;  %v1397_v24 = vmax.f32 %v2802_v46, %v1988_v42  ;;  %v1433_v25 = vmax.f32 %v2804_v47, %v2096_v33  ;;  %v905_v44 = vpop.f32.mrb[49].mxu0  ;;  %v1265_v10 = vpop.f32.mrb[49].mxu1 }
 0x141   :  { %1580 = vst.msk [vmem:[%s3158_s3 + $0x40] sm:$0xff] %vm1571_vm4, %v1543_v32  ;;  %v1509_v45 = vadd.f32 %v2903_v14, %v1466_v20  ;;  %v1396_v11 = vmax.f32 %v2806_v48, %v905_v44  ;;  %v1432_v12 = vmax.f32 %v2808_v49, %v1265_v10 }
 0x142   :  { %v1546_v15 = vmax.f32 %v1510_v43, 0.0  ;;  %v1469_v34 = vmax.f32 %v1397_v24, %v1433_v25 }
 0x143   :  { %v1545_v16 = vmax.f32 %v1509_v45, 0.0  ;;  %v1468_v35 = vmax.f32 %v1396_v11, %v1432_v12  ;;  %v1991_v46 = vpop.f32.mrb[50].mxu0  ;;  %v2099_v26 = vpop.f32.mrb[50].mxu1 }
 0x144   :  { %1583 = vst.msk [vmem:[%s3158_s3 + $0x58] sm:$0xff] %vm1571_vm4, %v1546_v15  ;;  %v1512_v47 = vadd.f32 %v2903_v14, %v1469_v34  ;;  %v1399_v27 = vmax.f32 %v2810_v50, %v1991_v46  ;;  %v1435_v36 = vmax.f32 %v2812_v51, %v2099_v26  ;;  %v915_v48 = vpop.f32.mrb[51].mxu0  ;;  %v1275_v9 = vpop.f32.mrb[51].mxu1 }
 0x145   :  { %1582 = vst.msk [vmem:[%s3158_s3 + $0x50] sm:$0xff] %vm1571_vm4, %v1545_v16  ;;  %v1511_v49 = vadd.f32 %v2903_v14, %v1468_v35  ;;  %v1398_v37 = vmax.f32 %v2814_v52, %v915_v48  ;;  %v1434_v28 = vmax.f32 %v2816_v53, %v1275_v9 }
 0x146   :  { %v1548_v13 = vmax.f32 %v1512_v47, 0.0  ;;  %v1471_v29 = vmax.f32 %v1399_v27, %v1435_v36 }
 0x147   :  { %v1547_v6 = vmax.f32 %v1511_v49, 0.0  ;;  %v1470_v7 = vmax.f32 %v1398_v37, %v1434_v28  ;;  %v1994_v50 = vpop.f32.mrb[52].mxu0  ;;  %v2102_v8 = vpop.f32.mrb[52].mxu1 }
 0x148   :  { %1585 = vst.msk [vmem:[%s3158_s3 + $0x68] sm:$0xff] %vm1571_vm4, %v1548_v13  ;;  %v1514_v51 = vadd.f32 %v2903_v14, %v1471_v29  ;;  %v1401_v38 = vmax.f32 %v2818_v54, %v1994_v50  ;;  %v1437_v17 = vmax.f32 %v2820_v55, %v2102_v8  ;;  %v925_v52 = vpop.f32.mrb[53].mxu0  ;;  %v1285_v39 = vpop.f32.mrb[53].mxu1  ;;  %v3184_v50 = vld [vmem:[#allocation3_spill] sm:$0xff] }
 0x149   :  { %1584 = vst.msk [vmem:[%s3158_s3 + $0x60] sm:$0xff] %vm1571_vm4, %v1547_v6  ;;  %v1513_v53 = vadd.f32 %v2903_v14, %v1470_v7  ;;  %v1400_v18 = vmax.f32 %v2822_v56, %v925_v52  ;;  %v1436_v21 = vmax.f32 %v2824_v57, %v1285_v39  ;;  %v3183_v6 = vld [vmem:[#allocation2_spill] sm:$0xff]  ;;  %v3186_v52 = vld [vmem:[#allocation5_spill] sm:$0xff] }
 0x14a   :  { %v1550_v40 = vmax.f32 %v1514_v51, 0.0  ;;  %v1473_v30 = vmax.f32 %v1401_v38, %v1437_v17  ;;  %v3185_v38 = vld [vmem:[#allocation4_spill] sm:$0xff] }
 0x14b   :  { %v1549_v41 = vmax.f32 %v1513_v53, 0.0  ;;  %v1472_v22 = vmax.f32 %v1400_v18, %v1436_v21  ;;  %v1997_v54 = vpop.f32.mrb[54].mxu0  ;;  %v2105_v31 = vpop.f32.mrb[54].mxu1 }
 0x14c   :  { %1587 = vst.msk [vmem:[%s3158_s3 + $0x78] sm:$0xff] %vm1571_vm4, %v1550_v40  ;;  %v1516_v55 = vadd.f32 %v2903_v14, %v1473_v30  ;;  %v1403_v23 = vmax.f32 %v2826_v58, %v1997_v54  ;;  %v1439_v19 = vmax.f32 %v2828_v59, %v2105_v31  ;;  %v935_v56 = vpop.f32.mrb[55].mxu0  ;;  %v1295_v32 = vpop.f32.mrb[55].mxu1  ;;  %v3187_v54 = vld [vmem:[#allocation6_spill] sm:$0xff] }
 0x14d   :  { %1586 = vst.msk [vmem:[%s3158_s3 + $0x70] sm:$0xff] %vm1571_vm4, %v1549_v41  ;;  %v1515_v57 = vadd.f32 %v2903_v14, %v1472_v22  ;;  %v1402_v20 = vmax.f32 %v2830_v60, %v935_v56  ;;  %v1438_v42 = vmax.f32 %v2832_v61, %v1295_v32 }
 0x14e   :  { %v1552_v33 = vmax.f32 %v1516_v55, 0.0  ;;  %v1475_v43 = vmax.f32 %v1403_v23, %v1439_v19  ;;  %v3188_v55 = vld [vmem:[#allocation7_spill] sm:$0xff] }
 0x14f   :  { %v1551_v24 = vmax.f32 %v1515_v57, 0.0  ;;  %v1474_v25 = vmax.f32 %v1402_v20, %v1438_v42  ;;  %v2000_v58 = vpop.f32.mrb[56].mxu0  ;;  %v2108_v44 = vpop.f32.mrb[56].mxu1  ;;  %v3189_v57 = vld [vmem:[#allocation8_spill] sm:$0xff]  ;;  %v3190_v42 = vld [vmem:[#allocation9_spill] sm:$0xff] }
 0x150   :  { %1589 = vst.msk [vmem:[%s3158_s3 + $0x88] sm:$0xff] %vm1571_vm4, %v1552_v33  ;;  %v1518_v59 = vadd.f32 %v2903_v14, %v1475_v43  ;;  %v1405_v10 = vmax.f32 %v2834_v62, %v2000_v58  ;;  %v1441_v45 = vmax.f32 %v2836_v63, %v2108_v44  ;;  %v945_v60 = vpop.f32.mrb[57].mxu0  ;;  %v1305_v11 = vpop.f32.mrb[57].mxu1 }
 0x151   :  { %1588 = vst.msk [vmem:[%s3158_s3 + $0x80] sm:$0xff] %vm1571_vm4, %v1551_v24  ;;  %v1517_v61 = vadd.f32 %v2903_v14, %v1474_v25  ;;  %v1404_v12 = vmax.f32 %v2838_v0, %v945_v60  ;;  %v1440_v15 = vmax.f32 %v2840_v1, %v1305_v11  ;;  %v3192_v11 = vld [vmem:[#allocation11_spill] sm:$0xff] }
 0x152   :  { %v1554_v34 = vmax.f32 %v1518_v59, 0.0  ;;  %v1477_v16 = vmax.f32 %v1405_v10, %v1441_v45  ;;  %v3191_v45 = vld [vmem:[#allocation10_spill] sm:$0xff] }
 0x153   :  { %v1553_v35 = vmax.f32 %v1517_v61, 0.0  ;;  %v1476_v46 = vmax.f32 %v1404_v12, %v1440_v15  ;;  %v2003_v62 = vpop.f32.mrb[58].mxu0  ;;  %v2111_v26 = vpop.f32.mrb[58].mxu1 }
 0x154   :  { %1591 = vst.msk [vmem:[%s3158_s3 + $0x98] sm:$0xff] %vm1571_vm4, %v1554_v34  ;;  %v1520_v63 = vadd.f32 %v2903_v14, %v1477_v16  ;;  %v1407_v47 = vmax.f32 %v2842_v2, %v2003_v62  ;;  %v1443_v27 = vmax.f32 %v2844_v3, %v2111_v26  ;;  %v955_v0 = vpop.f32.mrb[59].mxu0  ;;  %v1315_v36 = vpop.f32.mrb[59].mxu1  ;;  %v3193_v16 = vld [vmem:[#allocation12_spill] sm:$0xff] }
 0x155   :  { %1590 = vst.msk [vmem:[%s3158_s3 + $0x90] sm:$0xff] %vm1571_vm4, %v1553_v35  ;;  %v1519_v1 = vadd.f32 %v2903_v14, %v1476_v46  ;;  %v1406_v48 = vmax.f32 %v2846_v4, %v955_v0  ;;  %v1442_v9 = vmax.f32 %v2848_v5, %v1315_v36  ;;  %v3194_v46 = vld [vmem:[#allocation13_spill] sm:$0xff] }
 0x156   :  { %v1556_v49 = vmax.f32 %v1520_v63, 0.0  ;;  %v1479_v37 = vmax.f32 %v1407_v47, %v1443_v27 }
 0x157   :  { %v1555_v28 = vmax.f32 %v1519_v1, 0.0  ;;  %v1478_v13 = vmax.f32 %v1406_v48, %v1442_v9  ;;  %v2006_v2 = vpop.f32.mrb[60].mxu0  ;;  %v2114_v29 = vpop.f32.mrb[60].mxu1  ;;  %v3195_v48 = vld [vmem:[#allocation14_spill] sm:$0xff] }
 0x158   :  { %1593 = vst.msk [vmem:[%s3158_s3 + $0xa8] sm:$0xff] %vm1571_vm4, %v1556_v49  ;;  %v1522_v3 = vadd.f32 %v2903_v14, %v1479_v37  ;;  %v1409_v7 = vmax.f32 %v3183_v6, %v2006_v2  ;;  %v1445_v8 = vmax.f32 %v3184_v50, %v2114_v29  ;;  %v965_v4 = vpop.f32.mrb[61].mxu0  ;;  %v1325_v51 = vpop.f32.mrb[61].mxu1  ;;  %v3196_v49 = vld [vmem:[#allocation15_spill] sm:$0xff]  ;;  %v3197_v29 = vld [vmem:[#allocation16_spill] sm:$0xff]  ;;  %v3198_v6 = vld [vmem:[#allocation17_spill] sm:$0xff] }
 0x159   :  { %1592 = vst.msk [vmem:[%s3158_s3 + $0xa0] sm:$0xff] %vm1571_vm4, %v1555_v28  ;;  %v1521_v5 = vadd.f32 %v2903_v14, %v1478_v13  ;;  %v1408_v17 = vmax.f32 %v3185_v38, %v965_v4  ;;  %v1444_v39 = vmax.f32 %v3186_v52, %v1325_v51  ;;  %v3199_v52 = vld [vmem:[#allocation18_spill] sm:$0xff] }
 0x15a   :  { %v1558_v53 = vmax.f32 %v1522_v3, 0.0  ;;  %v1481_v18 = vmax.f32 %v1409_v7, %v1445_v8 }
 0x15b   :  { %v1557_v21 = vmax.f32 %v1521_v5, 0.0  ;;  %v1480_v40 = vmax.f32 %v1408_v17, %v1444_v39  ;;  %v2009_v30 = vpop.f32.mrb[62].mxu0  ;;  %v2117_v41 = vpop.f32.mrb[62].mxu1 }
 0x15c   :  { %1595 = vst.msk [vmem:[%s3158_s3 + $0xb8] sm:$0xff] %vm1571_vm4, %v1558_v53  ;;  %v1524_v22 = vadd.f32 %v2903_v14, %v1481_v18  ;;  %v1411_v31 = vmax.f32 %v3187_v54, %v2009_v30  ;;  %v1447_v23 = vmax.f32 %v3188_v55, %v2117_v41  ;;  %v975_v19 = vpop.f32.mrb[63].mxu0  ;;  %v1335_v56 = vpop.f32.mrb[63].mxu1  ;;  %v3200_v53 = vld [vmem:[#allocation19_spill] sm:$0xff]  ;;  %v3201_v41 = vld [vmem:[#allocation20_spill] sm:$0xff]  ;;  %v3202_v54 = vld [vmem:[#allocation21_spill] sm:$0xff] }
 0x15d   :  { %1594 = vst.msk [vmem:[%s3158_s3 + $0xb0] sm:$0xff] %vm1571_vm4, %v1557_v21  ;;  %v1523_v32 = vadd.f32 %v2903_v14, %v1480_v40  ;;  %v1410_v20 = vmax.f32 %v3189_v57, %v975_v19  ;;  %v1446_v33 = vmax.f32 %v3190_v42, %v1335_v56  ;;  %v3203_v42 = vld [vmem:[#allocation22_spill] sm:$0xff] }
 0x15e   :  { %v1560_v43 = vmax.f32 %v1524_v22, 0.0  ;;  %v1483_v24 = vmax.f32 %v1411_v31, %v1447_v23 }
 0x15f   :  { %v1559_v25 = vmax.f32 %v1523_v32, 0.0  ;;  %v1482_v58 = vmax.f32 %v1410_v20, %v1446_v33  ;;  %v2012_v44 = vpop.f32.mrb[64].mxu0  ;;  %v2120_v59 = vpop.f32.mrb[64].mxu1 }
 0x160   :  { %1597 = vst.msk [vmem:[%s3158_s3 + $0xc8] sm:$0xff] %vm1571_vm4, %v1560_v43  ;;  %v1526_v10 = vadd.f32 %v2903_v14, %v1483_v24  ;;  %v1413_v60 = vmax.f32 %v3191_v45, %v2012_v44  ;;  %v1449_v61 = vmax.f32 %v3192_v11, %v2120_v59  ;;  %v985_v12 = vpop.f32.mrb[65].mxu0  ;;  %v1345_v15 = vpop.f32.mrb[65].mxu1  ;;  %v3204_v43 = vld [vmem:[#allocation23_spill] sm:$0xff]  ;;  %v3205_v59 = vld [vmem:[#allocation24_spill] sm:$0xff]  ;;  %v3206_v45 = vld [vmem:[#allocation25_spill] sm:$0xff] }
 0x161   :  { %1596 = vst.msk [vmem:[%s3158_s3 + $0xc0] sm:$0xff] %vm1571_vm4, %v1559_v25  ;;  %v1525_v34 = vadd.f32 %v2903_v14, %v1482_v58  ;;  %v1412_v35 = vmax.f32 %v3193_v16, %v985_v12  ;;  %v1448_v62 = vmax.f32 %v3194_v46, %v1345_v15 }
 0x162   :  { %v1562_v26 = vmax.f32 %v1526_v10, 0.0  ;;  %v1485_v63 = vmax.f32 %v1413_v60, %v1449_v61 }
 0x163   :  { %v1561_v47 = vmax.f32 %v1525_v34, 0.0  ;;  %v1484_v27 = vmax.f32 %v1412_v35, %v1448_v62  ;;  %v2015_v0 = vpop.f32.mrb[66].mxu0  ;;  %v2123_v36 = vpop.f32.mrb[66].mxu1 }
 0x164   :  { %1599 = vst.msk [vmem:[%s3158_s3 + $0xd8] sm:$0xff] %vm1571_vm4, %v1562_v26  ;;  %v1528_v1 = vadd.f32 %v2903_v14, %v1485_v63  ;;  %v1415_v9 = vmax.f32 %v3195_v48, %v2015_v0  ;;  %v1451_v37 = vmax.f32 %v3196_v49, %v2123_v36  ;;  %v995_v28 = vpop.f32.mrb[67].mxu0  ;;  %v1355_v13 = vpop.f32.mrb[67].mxu1 }
 0x165   :  { %1598 = vst.msk [vmem:[%s3158_s3 + $0xd0] sm:$0xff] %vm1571_vm4, %v1561_v47  ;;  %v1527_v2 = vadd.f32 %v2903_v14, %v1484_v27  ;;  %v1414_v3 = vmax.f32 %v3197_v29, %v995_v28  ;;  %v1450_v7 = vmax.f32 %v3198_v6, %v1355_v13 }
 0x166   :  { %v1564_v50 = vmax.f32 %v1528_v1, 0.0  ;;  %v1487_v8 = vmax.f32 %v1415_v9, %v1451_v37 }
 0x167   :  { %v1563_v4 = vmax.f32 %v1527_v2, 0.0  ;;  %v1486_v51 = vmax.f32 %v1414_v3, %v1450_v7  ;;  %v2018_v5 = vpop.f32.mrb[68].mxu0  ;;  %v2126_v38 = vpop.f32.mrb[68].mxu1 }
 0x168   :  { %1601 = vst.msk [vmem:[%s3158_s3 + $0xe8] sm:$0xff] %vm1571_vm4, %v1564_v50  ;;  %v1530_v17 = vadd.f32 %v2903_v14, %v1487_v8  ;;  %v1417_v39 = vmax.f32 %v3199_v52, %v2018_v5  ;;  %v1453_v18 = vmax.f32 %v3200_v53, %v2126_v38  ;;  %v1005_v21 = vpop.f32.mrb[69].mxu0  ;;  %v1365_v40 = vpop.f32.mrb[69].mxu1 }
 0x169   :  { %1600 = vst.msk [vmem:[%s3158_s3 + $0xe0] sm:$0xff] %vm1571_vm4, %v1563_v4  ;;  %v1529_v30 = vadd.f32 %v2903_v14, %v1486_v51  ;;  %v1416_v22 = vmax.f32 %v3201_v41, %v1005_v21  ;;  %v1452_v31 = vmax.f32 %v3202_v54, %v1365_v40 }
 0x16a   :  { %v1566_v55 = vmax.f32 %v1530_v17, 0.0  ;;  %v1489_v23 = vmax.f32 %v1417_v39, %v1453_v18 }
 0x16b   :  { %v1565_v19 = vmax.f32 %v1529_v30, 0.0  ;;  %v1488_v56 = vmax.f32 %v1416_v22, %v1452_v31  ;;  %v2021_v32 = vpop.f32.mrb[70].mxu0  ;;  %v2129_v57 = vpop.f32.mrb[70].mxu1 }
 0x16c   :  { %1603 = vst.msk [vmem:[%s3158_s3 + $0xf8] sm:$0xff] %vm1571_vm4, %v1566_v55  ;;  %v1532_v20 = vadd.f32 %v2903_v14, %v1489_v23  ;;  %v1419_v33 = vmax.f32 %v3203_v42, %v2021_v32  ;;  %v1455_v24 = vmax.f32 %v3204_v43, %v2129_v57  ;;  %v1015_v25 = vpop.f32.mrb[71].mxu0  ;;  %v1375_v58 = vpop.f32.mrb[71].mxu1 }
 0x16d   :  { %1602 = vst.msk [vmem:[%s3158_s3 + $0xf0] sm:$0xff] %vm1571_vm4, %v1565_v19  ;;  %v1531_v44 = vadd.f32 %v2903_v14, %v1488_v56  ;;  %v1418_v10 = vmax.f32 %v3205_v59, %v1015_v25  ;;  %v1454_v60 = vmax.f32 %v3206_v45, %v1375_v58 }
 0x16e   :  { %v1568_v11 = vmax.f32 %v1532_v20, 0.0  ;;  %v1491_v61 = vmax.f32 %v1419_v33, %v1455_v24 }
 0x16f   :  { %v1567_v12 = vmax.f32 %v1531_v44, 0.0  ;;  %v1490_v15 = vmax.f32 %v1418_v10, %v1454_v60 }
 0x170   :  { %1605 = vst.msk [vmem:[%s3158_s3 + $0x108] sm:$0xff] %vm1571_vm4, %v1568_v11  ;;  %v1534_v34 = vadd.f32 %v2903_v14, %v1491_v61 }
 0x171   :  { %1604 = vst.msk [vmem:[%s3158_s3 + $0x100] sm:$0xff] %vm1571_vm4, %v1567_v12  ;;  %v1533_v16 = vadd.f32 %v2903_v14, %v1490_v15 }
 0x172   :  { %v1570_v35 = vmax.f32 %v1534_v34, 0.0 }
 0x173   :  { %v1569_v46 = vmax.f32 %v1533_v16, 0.0 }
 0x174   :  { %1607 = vst.msk [vmem:[%s3158_s3 + $0x118] sm:$0xff] %vm1571_vm4, %v1570_v35 }
 0x175   :  { %1606 = vst.msk [vmem:[%s3158_s3 + $0x110] sm:$0xff] %vm1571_vm4, %v1569_v46 }

// kernel: net_forward.3
= control target key start
LH: loop header
LB: loop body
LE: loop exit
PB: predicated region body
PF: predicated region fallthrough
CT: control target
= control target key end

     0   :  { %vm91_vm0 = vcmask 998400   ;;  %s2881_s0 = inlined_call_operand.vmem [shape: f32[128,250], index: 0, kind: input, shape index: {}]   ;;  %s2882_s1 = inlined_call_operand.vmem [shape: f32[250,20], index: 1, kind: input, shape index: {}]   ;;  %s2883_s2 = inlined_call_operand.vmem [shape: f32[1,20], index: 2, kind: input, shape index: {}]   ;;  %s2884_s3 = inlined_call_operand.vmem [shape: f32[16,20,50], index: 3, kind: input, shape index: {}]   ;;  %s2885_s4 = inlined_call_operand.vmem [shape: f32[1,50], index: 4, kind: input, shape index: {}]   ;;  %s2886_s5 = inlined_call_operand.vmem [shape: f32[50,10], index: 5, kind: input, shape index: {}]   ;;  %s2887_s6 = inlined_call_operand.vmem [shape: f32[1,10], index: 6, kind: input, shape index: {}]   ;;  %s2888_s7 = inlined_call_operand.hbm [shape: f32[2,10], index: 7, kind: output, shape index: {}]  }
   0x1   :  { %v75_v0 = vld [vmem:[%s2882_s1 + $0x80] sm:$0xff]  ;;  %v76_v1 = vld [vmem:[%s2882_s1 + $0x88] sm:$0xff]  ;;  %v77_v5 = vld [vmem:[%s2882_s1 + $0x90] sm:$0xff] }
   0x2   :  { %v59_v2 = vld [vmem:[%s2882_s1] sm:$0xff]  ;;  %v2154_v3 = vpack.c.bf16 %v76_v1, %v75_v0  ;;  %v60_v4 = vld [vmem:[%s2882_s1 + $0x8] sm:$0xff]  ;;  %v78_v6 = vld [vmem:[%s2882_s1 + $0x98] sm:$0xff] }
   0x3   :  { %v2156_v7 = vpack.c.bf16 %v60_v4, %v59_v2  ;;  %v2158_v8 = vpack.c.bf16 %v78_v6, %v77_v5  ;;  %v61_v9 = vld [vmem:[%s2882_s1 + $0x10] sm:$0xff]  ;;  %v62_v10 = vld [vmem:[%s2882_s1 + $0x18] sm:$0xff]  ;;  %v79_v11 = vld [vmem:[%s2882_s1 + $0xa0] sm:$0xff] }
   0x4   :  { %2155 = vmatprep.subr.bf16.mxu0 %v2154_v3  ;;  %v80_v12 = vld [vmem:[%s2882_s1 + $0xa8] sm:$0xff]  ;;  %v2160_v13 = vpack.c.bf16 %v62_v10, %v61_v9  ;;  %v63_v15 = vld [vmem:[%s2882_s1 + $0x20] sm:$0xff]  ;;  %v81_v17 = vld [vmem:[%s2882_s1 + $0xb0] sm:$0xff] }
   0x5   :  { %2157 = vmatpush3.bf16.msra.mxu0 %v2156_v7  ;;  %v2162_v14 = vpack.c.bf16 %v80_v12, %v79_v11  ;;  %v64_v16 = vld [vmem:[%s2882_s1 + $0x28] sm:$0xff]  ;;  %v82_v18 = vld [vmem:[%s2882_s1 + $0xb8] sm:$0xff]  ;;  %v65_v21 = vld [vmem:[%s2882_s1 + $0x30] sm:$0xff] }
   0x6   :  { %2159 = vmatprep.subr.bf16.mxu0 %v2158_v8  ;;  %v2164_v19 = vpack.c.bf16 %v64_v16, %v63_v15  ;;  %v2166_v20 = vpack.c.bf16 %v82_v18, %v81_v17  ;;  %v66_v22 = vld [vmem:[%s2882_s1 + $0x38] sm:$0xff]  ;;  %v83_v23 = vld [vmem:[%s2882_s1 + $0xc0] sm:$0xff]  ;;  %v84_v24 = vld [vmem:[%s2882_s1 + $0xc8] sm:$0xff] }
   0x7   :  { %v28_v25 = vld [vmem:[%s2881_s0 + $0x8] sm:$0xff]  ;;  %v2168_v26 = vpack.c.bf16 %v66_v22, %v65_v21  ;;  %v2170_v27 = vpack.c.bf16 %v84_v24, %v83_v23  ;;  %v67_v28 = vld [vmem:[%s2882_s1 + $0x40] sm:$0xff]  ;;  %v85_v30 = vld [vmem:[%s2882_s1 + $0xd0] sm:$0xff] }
   0x8   :  { %1743 = vmatprep.mubr.msk.f32.mxu0 %vm91_vm0, %v28_v25  ;;  %v68_v29 = vld [vmem:[%s2882_s1 + $0x48] sm:$0xff]  ;;  %v86_v31 = vld [vmem:[%s2882_s1 + $0xd8] sm:$0xff]  ;;  %v69_v34 = vld [vmem:[%s2882_s1 + $0x50] sm:$0xff] }
   0x9   :  { %2161 = vmatpush3.bf16.msra.mxu0 %v2160_v13  ;;  %v2172_v32 = vpack.c.bf16 %v68_v29, %v67_v28  ;;  %v2174_v33 = vpack.c.bf16 %v86_v31, %v85_v30  ;;  %v70_v35 = vld [vmem:[%s2882_s1 + $0x58] sm:$0xff]  ;;  %v87_v36 = vld [vmem:[%s2882_s1 + $0xe0] sm:$0xff]  ;;  %v88_v37 = vld [vmem:[%s2882_s1 + $0xe8] sm:$0xff] }
   0xa   :  { %2163 = vmatprep.subr.bf16.mxu0 %v2162_v14  ;;  %v2176_v38 = vpack.c.bf16 %v70_v35, %v69_v34  ;;  %v2178_v39 = vpack.c.bf16 %v88_v37, %v87_v36  ;;  %v71_v40 = vld [vmem:[%s2882_s1 + $0x60] sm:$0xff]  ;;  %v72_v41 = vld [vmem:[%s2882_s1 + $0x68] sm:$0xff] }
   0xd   :  { %2165 = vmatpush3.bf16.msra.mxu0 %v2164_v19 }
   0xe   :  { %2167 = vmatprep.subr.bf16.mxu0 %v2166_v20 }
  0x11   :  { %2169 = vmatpush3.bf16.msra.mxu0 %v2168_v26 }
  0x12   :  { %2171 = vmatprep.subr.bf16.mxu0 %v2170_v27 }
  0x15   :  { %2173 = vmatpush3.bf16.msra.mxu0 %v2172_v32 }
  0x16   :  { %2175 = vmatprep.subr.bf16.mxu0 %v2174_v33 }
  0x17   :  { %12 = vsyncpa [#allocation3], 0  ;;  %v89_v42 = vld [vmem:[%s2882_s1 + $0xf0] sm:$0xff]  ;;  %v90_v43 = vld [vmem:[%s2882_s1 + $0xf8] sm:$0x3]  ;;  %vm140_vm1 = vcmask 1041408   ;;  %v2180_v44 = vpack.c.bf16 %v72_v41, %v71_v40 }
  0x18   :  { %v2182_v45 = vpack.c.bf16 %v90_v43, %v89_v42  ;;  %v73_v46 = vld [vmem:[%s2882_s1 + $0x70] sm:$0xff]  ;;  %v74_v47 = vld [vmem:[%s2882_s1 + $0x78] sm:$0xff]  ;;  %vm2308_vm2 = vmmov 1   ;;  %v27_v49 = vld [vmem:[%s2881_s0] sm:$0xff]  ;;  %v2309_v19 = vmov 0.0|0.0   ;;  %v2310_v20 = vmov 0.0  }
  0x19   :  { %2177 = vmatpush3.bf16.msra.mxu0 %v2176_v38  ;;  %vm2183_vm3 = vmpackc.low %vm140_vm1, %vm2308_vm2  ;;  %v2185_v48 = vpack.c.bf16 %v74_v47, %v73_v46  ;;  %v30_v50 = vld [vmem:[%s2881_s0 + $0x18] sm:$0xff]  ;;  %v29_v51 = vld [vmem:[%s2881_s0 + $0x10] sm:$0xff]  ;;  %2187 = vmatprep.subr.bf16.mxu1 %v2309_v19  ;;  %vm331_vm4 = vcmask 1043456   ;;  %vm2311_vm5 = vmmov 0   ;;  %vm327_vm6 = vcmask 162816  }
  0x1a   :  { %2179 = vmatprep.subr.bf16.mxu0 %v2178_v39  ;;  %v32_v52 = vld [vmem:[%s2881_s0 + $0x28] sm:$0xff]  ;;  %v31_v53 = vld [vmem:[%s2881_s0 + $0x20] sm:$0xff]  ;;  %v34_v54 = vld [vmem:[%s2881_s0 + $0x38] sm:$0xff]  ;;  %1999 = vmatprep.mubr.msk.f32.mxu1 %vm2311_vm5, %v2310_v20  ;;  %vm1636_vm7 = vcmask 408576   ;;  %vm1713_vm8 = vcmask 74752  }
  0x1b   :  { %v33_v55 = vld [vmem:[%s2881_s0 + $0x30] sm:$0xff]  ;;  %v36_v56 = vld [vmem:[%s2881_s0 + $0x48] sm:$0xff]  ;;  %v35_v57 = vld [vmem:[%s2881_s0 + $0x40] sm:$0xff] }
  0x1c   :  { %v38_v58 = vld [vmem:[%s2881_s0 + $0x58] sm:$0xff]  ;;  %v37_v59 = vld [vmem:[%s2881_s0 + $0x50] sm:$0xff]  ;;  %v40_v60 = vld [vmem:[%s2881_s0 + $0x68] sm:$0xff] }
  0x1d   :  { %2181 = vmatpush3.bf16.msra.mxu0 %v2180_v44  ;;  %v39_v61 = vld [vmem:[%s2881_s0 + $0x60] sm:$0xff]  ;;  %v42_v62 = vld [vmem:[%s2881_s0 + $0x78] sm:$0xff]  ;;  %v41_v63 = vld [vmem:[%s2881_s0 + $0x70] sm:$0xff] }
  0x1e   :  { %2184 = vmatprep.subr.msk.bf16.mxu0 %vm2183_vm3, %v2182_v45  ;;  %v44_v0 = vld [vmem:[%s2881_s0 + $0x88] sm:$0xff]  ;;  %v43_v1 = vld [vmem:[%s2881_s0 + $0x80] sm:$0xff]  ;;  %v46_v2 = vld [vmem:[%s2881_s0 + $0x98] sm:$0xff] }
  0x1f   :  { %v45_v3 = vld [vmem:[%s2881_s0 + $0x90] sm:$0xff]  ;;  %v48_v4 = vld [vmem:[%s2881_s0 + $0xa8] sm:$0xff]  ;;  %v47_v5 = vld [vmem:[%s2881_s0 + $0xa0] sm:$0xff] }
  0x20   :  { %v50_v6 = vld [vmem:[%s2881_s0 + $0xb8] sm:$0xff]  ;;  %v49_v7 = vld [vmem:[%s2881_s0 + $0xb0] sm:$0xff]  ;;  %v52_v8 = vld [vmem:[%s2881_s0 + $0xc8] sm:$0xff] }
  0x21   :  { %2186 = vmatpush3.bf16.msra.mxu0 %v2185_v48  ;;  %v51_v9 = vld [vmem:[%s2881_s0 + $0xc0] sm:$0xff]  ;;  %v54_v10 = vld [vmem:[%s2881_s0 + $0xd8] sm:$0xff]  ;;  %v53_v11 = vld [vmem:[%s2881_s0 + $0xd0] sm:$0xff] }
  0x22   :  { %v56_v12 = vld [vmem:[%s2881_s0 + $0xe8] sm:$0xff]  ;;  %v55_v13 = vld [vmem:[%s2881_s0 + $0xe0] sm:$0xff]  ;;  %v58_v14 = vld [vmem:[%s2881_s0 + $0xf8] sm:$0xff]  ;;  %2235 = vmatprep.subr.bf16.mxu0 %v2309_v19 }
  0x23   :  { %v57_v15 = vld [vmem:[%s2881_s0 + $0xf0] sm:$0xff]  ;;  %v324_v16 = vld [vmem:[%s2884_s3] sm:$0xff]  ;;  %v325_v17 = vld [vmem:[%s2884_s3 + $0x8] sm:$0xff] }
  0x24   :  { %209 = vmatmul.mubr.f32.vlgmr.msra.gmra.mrb[0].mxu0 %v27_v49  ;;  %v2188_v18 = vpack.c.bf16 %v325_v17, %v324_v16  ;;  %v326_v21 = vld [vmem:[%s2884_s3 + $0x10] sm:$0xf] }
  0x25   :  { %1744 = vmatprep.mubr.msk.f32.mxu0 %vm91_vm0, %v30_v50 }
  0x26   :  { %2189 = vmatpush3.bf16.msra.mxu1 %v2188_v18  ;;  %v1626_v18 = vld [vmem:[%s2886_s5 + $0x20] sm:$0xff] }
  0x27   :  { %1997 = vmatprep.subr.mxu1 %v2310_v20 }
  0x28   :  { %214 = vmatmul.mubr.f32.gmra.mrb[2].mxu0 %v29_v51 }
  0x29   :  { %1745 = vmatprep.mubr.msk.f32.mxu0 %vm91_vm0, %v32_v52 }
  0x2a   :  { %1998 = vmatpush3.msk.msra.mxu1 %vm331_vm4, %v326_v21  ;;  %v1627_v21 = vld [vmem:[%s2886_s5 + $0x28] sm:$0xff] }
  0x2b   :  { %2190 = vmatprep.subr.bf16.mxu1 %v2309_v19 }
  0x2c   :  { %219 = vmatmul.mubr.f32.gmra.mrb[4].mxu0 %v31_v53 }
  0x2d   :  { %1746 = vmatprep.mubr.msk.f32.mxu0 %vm91_vm0, %v34_v54 }
  0x30   :  { %224 = vmatmul.mubr.f32.gmra.mrb[6].mxu0 %v33_v55 }
  0x31   :  { %1747 = vmatprep.mubr.msk.f32.mxu0 %vm91_vm0, %v36_v56 }
  0x34   :  { %229 = vmatmul.mubr.f32.gmra.mrb[8].mxu0 %v35_v57 }
  0x35   :  { %1748 = vmatprep.mubr.msk.f32.mxu0 %vm91_vm0, %v38_v58 }
  0x38   :  { %234 = vmatmul.mubr.f32.gmra.mrb[10].mxu0 %v37_v59 }
  0x39   :  { %1749 = vmatprep.mubr.msk.f32.mxu0 %vm91_vm0, %v40_v60 }
  0x3c   :  { %239 = vmatmul.mubr.f32.gmra.mrb[12].mxu0 %v39_v61 }
  0x3d   :  { %1750 = vmatprep.mubr.msk.f32.mxu0 %vm91_vm0, %v42_v62 }
  0x40   :  { %244 = vmatmul.mubr.f32.gmra.mrb[14].mxu0 %v41_v63 }
  0x41   :  { %1751 = vmatprep.mubr.msk.f32.mxu0 %vm91_vm0, %v44_v0 }
  0x44   :  { %249 = vmatmul.mubr.f32.gmra.mrb[16].mxu0 %v43_v1 }
  0x45   :  { %1752 = vmatprep.mubr.msk.f32.mxu0 %vm91_vm0, %v46_v2 }
  0x48   :  { %254 = vmatmul.mubr.f32.gmra.mrb[18].mxu0 %v45_v3  ;;  %v1622_v3 = vld [vmem:[%s2886_s5] sm:$0xff] }
  0x49   :  { %1753 = vmatprep.mubr.msk.f32.mxu0 %vm91_vm0, %v48_v4  ;;  %v1623_v4 = vld [vmem:[%s2886_s5 + $0x8] sm:$0xff] }
  0x4c   :  { %259 = vmatmul.mubr.f32.gmra.mrb[20].mxu0 %v47_v5  ;;  %v1624_v5 = vld [vmem:[%s2886_s5 + $0x10] sm:$0xff] }
  0x4d   :  { %1754 = vmatprep.mubr.msk.f32.mxu0 %vm91_vm0, %v50_v6  ;;  %v2604_v6 = vld [vmem:[%s2883_s2] ss:$0 sm:$0xff] }
  0x50   :  { %264 = vmatmul.mubr.f32.gmra.mrb[22].mxu0 %v49_v7 }
  0x51   :  { %1755 = vmatprep.mubr.msk.f32.mxu0 %vm91_vm0, %v52_v8  ;;  %v2236_v8 = vpack.c.bf16 %v1623_v4, %v1622_v3 }
  0x53   :  { %2237 = vmatpush3.bf16.msra.mxu0 %v2236_v8 }
  0x54   :  { %269 = vmatmul.mubr.f32.gmra.mrb[24].mxu0 %v51_v9  ;;  %v1625_v9 = vld [vmem:[%s2886_s5 + $0x18] sm:$0xff]  ;;  %2238 = vmatprep.subr.bf16.mxu0 %v2309_v19 }
  0x55   :  { %1756 = vmatprep.mubr.msk.f32.mxu0 %vm91_vm0, %v54_v10 }
  0x58   :  { %274 = vmatmul.mubr.f32.gmra.mrb[26].mxu0 %v53_v11 }
  0x59   :  { %1757 = vmatprep.mubr.msk.f32.mxu0 %vm91_vm0, %v56_v12  ;;  %v1763_v12 = vld [vmem:[%s2884_s3 + $0x18] sm:$0xff] }
  0x5c   :  { %279 = vmatmul.mubr.f32.gmra.mrb[28].mxu0 %v55_v13  ;;  %v1764_v13 = vld [vmem:[%s2884_s3 + $0x20] sm:$0xff] }
  0x5d   :  { %1758 = vmatprep.mubr.msk.f32.mxu0 %vm91_vm0, %v58_v14  ;;  %v2239_v14 = vpack.c.bf16 %v1625_v9, %v1624_v5  ;;  %v1795_v5 = vld [vmem:[%s2884_s3 + $0xb8] sm:$0xf] }
  0x5f   :  { %2240 = vmatpush3.bf16.msra.mxu0 %v2239_v14 }
  0x60   :  { %284 = vmatmul.mubr.f32.gmra.mrb[30].mxu0 %v57_v15  ;;  %2241 = vmatprep.subr.bf16.mxu0 %v2309_v19 }
  0x61   :  { %2151 = vmatprep.mubr.msk.f32.mxu0 %vm2311_vm5, %v2310_v20 }
  0xf7   :  { %v1873_v22 = vpop.f32.mrb[0].mxu0 }
  0xf8   :  { %v1874_v23 = vpop.f32.mrb[1].mxu0 }
  0xf9   :  { %v1875_v24 = vadd.f32 %v1874_v23, %v1873_v22  ;;  %v2191_v23 = vpack.c.bf16 %v1764_v13, %v1763_v12  ;;  %v1804_v12 = vld [vmem:[%s2884_s3 + $0xe0] sm:$0xff] }
  0xfb   :  { %v1876_v25 = vpop.f32.mrb[2].mxu0 }
  0xfc   :  { %v1877_v26 = vpop.f32.mrb[3].mxu0 }
  0xfd   :  { %v2580_v27 = vadd.f32 %v1877_v26, %v1876_v25 }
  0xff   :  { %v1879_v28 = vpop.f32.mrb[4].mxu0 }
 0x100   :  { %v1880_v29 = vpop.f32.mrb[5].mxu0 }
 0x101   :  { %v2582_v30 = vadd.f32 %v1880_v29, %v1879_v28 }
 0x103   :  { %v1882_v31 = vpop.f32.mrb[6].mxu0 }
 0x104   :  { %v1883_v32 = vpop.f32.mrb[7].mxu0 }
 0x105   :  { %v2584_v33 = vadd.f32 %v1883_v32, %v1882_v31 }
 0x107   :  { %v1885_v34 = vpop.f32.mrb[8].mxu0 }
 0x108   :  { %v1886_v35 = vpop.f32.mrb[9].mxu0 }
 0x109   :  { %v1887_v36 = vadd.f32 %v1886_v35, %v1885_v34  ;;  %v1765_v34 = vld [vmem:[%s2884_s3 + $0x28] sm:$0xf]  ;;  %v1768_v35 = vld [vmem:[%s2884_s3 + $0x30] sm:$0xff] }
 0x10b   :  { %v289_v37 = vmax.f32 %v1875_v24, %v1887_v36  ;;  %v1888_v38 = vpop.f32.mrb[10].mxu0  ;;  %v1769_v36 = vld [vmem:[%s2884_s3 + $0x38] sm:$0xff] }
 0x10c   :  { %v1889_v39 = vpop.f32.mrb[11].mxu0 }
 0x10d   :  { %v1890_v40 = vadd.f32 %v1889_v39, %v1888_v38  ;;  %v1628_v39 = vld [vmem:[%s2886_s5 + $0x30] sm:$0x3] }
 0x10f   :  { %v290_v41 = vmax.f32 %v2580_v27, %v1890_v40  ;;  %v1891_v42 = vpop.f32.mrb[12].mxu0  ;;  %v2242_v27 = vpack.c.bf16 %v1627_v21, %v1626_v18  ;;  %v2194_v40 = vpack.c.bf16 %v1769_v36, %v1768_v35  ;;  %v1824_v35 = vld [vmem:[%s2884_s3 + $0x140] sm:$0xff] }
 0x110   :  { %v1892_v43 = vpop.f32.mrb[13].mxu0 }
 0x111   :  { %v1893_v44 = vadd.f32 %v1892_v43, %v1891_v42  ;;  %2243 = vmatpush3.bf16.msra.mxu0 %v2242_v27  ;;  %v1815_v27 = vld [vmem:[%s2884_s3 + $0x118] sm:$0xf] }
 0x112   :  { %2149 = vmatprep.subr.mxu0 %v2310_v20 }
 0x113   :  { %v291_v45 = vmax.f32 %v2582_v30, %v1893_v44  ;;  %v1894_v46 = vpop.f32.mrb[14].mxu0  ;;  %v1773_v44 = vld [vmem:[%s2884_s3 + $0x48] sm:$0xff] }
 0x114   :  { %v1895_v47 = vpop.f32.mrb[15].mxu0 }
 0x115   :  { %v2588_v48 = vadd.f32 %v1895_v47, %v1894_v46  ;;  %2150 = vmatpush3.msk.msra.mxu0 %vm140_vm1, %v1628_v39  ;;  %v1828_v39 = vld [vmem:[%s2884_s3 + $0x150] sm:$0xff] }
 0x117   :  { %v292_v49 = vmax.f32 %v2584_v33, %v2588_v48  ;;  %v1897_v50 = vpop.f32.mrb[16].mxu0  ;;  %v1770_v33 = vld [vmem:[%s2884_s3 + $0x40] sm:$0xf]  ;;  %v1775_v48 = vld [vmem:[%s2884_s3 + $0x58] sm:$0xf] }
 0x118   :  { %v1898_v51 = vpop.f32.mrb[17].mxu0 }
 0x119   :  { %v1899_v52 = vadd.f32 %v1898_v51, %v1897_v50  ;;  %v1779_v50 = vld [vmem:[%s2884_s3 + $0x68] sm:$0xff] }
 0x11b   :  { %v1900_v53 = vpop.f32.mrb[18].mxu0 }
 0x11c   :  { %v1901_v54 = vpop.f32.mrb[19].mxu0 }
 0x11d   :  { %v1902_v55 = vadd.f32 %v1901_v54, %v1900_v53  ;;  %v1780_v54 = vld [vmem:[%s2884_s3 + $0x70] sm:$0xf] }
 0x11f   :  { %v1903_v56 = vpop.f32.mrb[20].mxu0 }
 0x120   :  { %v1904_v57 = vpop.f32.mrb[21].mxu0 }
 0x121   :  { %v1905_v58 = vadd.f32 %v1904_v57, %v1903_v56  ;;  %v1784_v56 = vld [vmem:[%s2884_s3 + $0x80] sm:$0xff] }
 0x123   :  { %v1906_v59 = vpop.f32.mrb[22].mxu0 }
 0x124   :  { %v1907_v60 = vpop.f32.mrb[23].mxu0 }
 0x125   :  { %v1908_v61 = vadd.f32 %v1907_v60, %v1906_v59  ;;  %v1785_v59 = vld [vmem:[%s2884_s3 + $0x88] sm:$0xf]  ;;  %v1788_v60 = vld [vmem:[%s2884_s3 + $0x90] sm:$0xff] }
 0x127   :  { %v1909_v62 = vpop.f32.mrb[24].mxu0 }
 0x128   :  { %v1910_v63 = vpop.f32.mrb[25].mxu0 }
 0x129   :  { %v1911_v0 = vadd.f32 %v1910_v63, %v1909_v62 }
 0x12b   :  { %v293_v1 = vmax.f32 %v1899_v52, %v1911_v0  ;;  %v1912_v2 = vpop.f32.mrb[26].mxu0  ;;  %v1790_v0 = vld [vmem:[%s2884_s3 + $0xa0] sm:$0xf] }
 0x12c   :  { %v1913_v7 = vpop.f32.mrb[27].mxu0 }
 0x12d   :  { %v297_v10 = vmax.f32 %v289_v37, %v293_v1  ;;  %v1914_v11 = vadd.f32 %v1913_v7, %v1912_v2  ;;  %v1793_v1 = vld [vmem:[%s2884_s3 + $0xa8] sm:$0xff]  ;;  %v1794_v2 = vld [vmem:[%s2884_s3 + $0xb0] sm:$0xff] }
 0x12e   :  { %v2209_v3 = vpack.c.bf16 %v1794_v2, %v1793_v1  ;;  %v1799_v7 = vld [vmem:[%s2884_s3 + $0xc8] sm:$0xff] }
 0x12f   :  { %v308_v15 = vadd.f32 %v2604_v6, %v297_v10  ;;  %v294_v16 = vmax.f32 %v1902_v55, %v1914_v11  ;;  %v1915_v17 = vpop.f32.mrb[28].mxu0  ;;  %v1783_v55 = vld [vmem:[%s2884_s3 + $0x78] sm:$0xff]  ;;  %v1800_v10 = vld [vmem:[%s2884_s3 + $0xd0] sm:$0xf] }
 0x130   :  { %v1916_v22 = vpop.f32.mrb[29].mxu0  ;;  %v2203_v57 = vpack.c.bf16 %v1784_v56, %v1783_v55  ;;  %v1803_v11 = vld [vmem:[%s2884_s3 + $0xd8] sm:$0xff] }
 0x131   :  { %v312_v24 = vmax.f32 %v308_v15, 0.0  ;;  %v298_v25 = vmax.f32 %v290_v41, %v294_v16  ;;  %v1917_v26 = vadd.f32 %v1916_v22, %v1915_v17  ;;  %v2215_v13 = vpack.c.bf16 %v1804_v12, %v1803_v11  ;;  %v1805_v15 = vld [vmem:[%s2884_s3 + $0xe8] sm:$0xf]  ;;  %v1808_v16 = vld [vmem:[%s2884_s3 + $0xf0] sm:$0xff]  ;;  %v1809_v17 = vld [vmem:[%s2884_s3 + $0xf8] sm:$0xff] }
 0x132   :  { %v2218_v18 = vpack.c.bf16 %v1809_v17, %v1808_v16  ;;  %v1810_v22 = vld [vmem:[%s2884_s3 + $0x100] sm:$0xf] }
 0x133   :  { %v295_v28 = vmax.f32 %v1905_v58, %v1917_v26  ;;  %v1918_v29 = vpop.f32.mrb[30].mxu0  ;;  %2000 = vmatmul.mubr.msk.f32.vlgmr.msra.gmra.mrb[0].mxu1 %vm327_vm6, %v312_v24  ;;  %v410_v42 = vrot.slane %v312_v24, 2  ;;  %v491_v47 = vrot.slane %v312_v24, 4  ;;  %v572_v52 = vrot.slane %v312_v24, 6  ;;  %v1814_v24 = vld [vmem:[%s2884_s3 + $0x110] sm:$0xff] }
 0x134   :  { %2192 = vmatpush3.bf16.msra.mxu1 %v2191_v23  ;;  %v1919_v30 = vpop.f32.mrb[31].mxu0  ;;  %2008 = vmatprep.mubr.msk.f32.mxu1 %vm2311_vm5, %v2310_v20  ;;  %v309_v53 = vadd.f32 %v2604_v6, %v298_v25  ;;  %v1813_v23 = vld [vmem:[%s2884_s3 + $0x108] sm:$0xff] }
 0x135   :  { %v299_v31 = vmax.f32 %v291_v45, %v295_v28  ;;  %v1920_v32 = vadd.f32 %v1919_v30, %v1918_v29  ;;  %2006 = vmatprep.subr.mxu1 %v2310_v20  ;;  %v1774_v45 = vld [vmem:[%s2884_s3 + $0x50] sm:$0xff]  ;;  %v2221_v25 = vpack.c.bf16 %v1814_v24, %v1813_v23  ;;  %v1818_v28 = vld [vmem:[%s2884_s3 + $0x120] sm:$0xff]  ;;  %v1819_v29 = vld [vmem:[%s2884_s3 + $0x128] sm:$0xff] }
 0x136   :  { %v2197_v46 = vpack.c.bf16 %v1774_v45, %v1773_v44  ;;  %v313_v58 = vmax.f32 %v309_v53, 0.0  ;;  %v2224_v30 = vpack.c.bf16 %v1819_v29, %v1818_v28  ;;  %v1834_v44 = vld [vmem:[%s2884_s3 + $0x170] sm:$0xff] }
 0x137   :  { %v2638_v37 = vadd.f32 %v2604_v6, %v299_v31  ;;  %v296_v38 = vmax.f32 %v1908_v61, %v1920_v32  ;;  %v1789_v61 = vld [vmem:[%s2884_s3 + $0x98] sm:$0xff]  ;;  %v1820_v32 = vld [vmem:[%s2884_s3 + $0x130] sm:$0xf] }
 0x138   :  { %2007 = vmatpush3.msk.msra.mxu1 %vm331_vm4, %v1765_v34  ;;  %v2206_v62 = vpack.c.bf16 %v1789_v61, %v1788_v60  ;;  %v734_v63 = vrot.slane %v313_v58, 2  ;;  %v815_v4 = vrot.slane %v313_v58, 4  ;;  %v896_v9 = vrot.slane %v313_v58, 6  ;;  %v1823_v34 = vld [vmem:[%s2884_s3 + $0x138] sm:$0xff] }
 0x139   :  { %v300_v41 = vmax.f32 %v292_v49, %v296_v38  ;;  %2193 = vmatprep.subr.bf16.mxu1 %v2309_v19  ;;  %v1778_v49 = vld [vmem:[%s2884_s3 + $0x60] sm:$0xff]  ;;  %v314_v14 = vmax.f32 %v2638_v37, 0.0  ;;  %v2227_v36 = vpack.c.bf16 %v1824_v35, %v1823_v34  ;;  %v1825_v38 = vld [vmem:[%s2884_s3 + $0x148] sm:$0xf] }
 0x13a   :  { %v2200_v51 = vpack.c.bf16 %v1779_v50, %v1778_v49 }
 0x13b   :  { %v2651_v43 = vadd.f32 %v2604_v6, %v300_v41  ;;  %2009 = vmatmul.mubr.msk.f32.vlgmr.msra.gmra.mrb[0].mxu1 %vm327_vm6, %v410_v42  ;;  %v1798_v6 = vld [vmem:[%s2884_s3 + $0xc0] sm:$0xff]  ;;  %v1058_v21 = vrot.slane %v314_v14, 2  ;;  %v1139_v26 = vrot.slane %v314_v14, 4  ;;  %v1220_v31 = vrot.slane %v314_v14, 6 }
 0x13c   :  { %2195 = vmatpush3.bf16.msra.mxu1 %v2194_v40  ;;  %2017 = vmatprep.mubr.msk.f32.mxu1 %vm2311_vm5, %v2310_v20  ;;  %v2212_v8 = vpack.c.bf16 %v1799_v7, %v1798_v6  ;;  %v1829_v40 = vld [vmem:[%s2884_s3 + $0x158] sm:$0xff] }
 0x13d   :  { %2015 = vmatprep.subr.mxu1 %v2310_v20  ;;  %v315_v37 = vmax.f32 %v2651_v43, 0.0  ;;  %v2230_v41 = vpack.c.bf16 %v1829_v40, %v1828_v39  ;;  %v1830_v43 = vld [vmem:[%s2884_s3 + $0x160] sm:$0xf] }
 0x13f   :  { %v1382_v42 = vrot.slane %v315_v37, 2 }
 0x140   :  { %2016 = vmatpush3.msk.msra.mxu1 %vm331_vm4, %v1770_v33  ;;  %v1833_v33 = vld [vmem:[%s2884_s3 + $0x168] sm:$0xff] }
 0x141   :  { %2196 = vmatprep.subr.bf16.mxu1 %v2309_v19  ;;  %v2233_v45 = vpack.c.bf16 %v1834_v44, %v1833_v33 }
 0x143   :  { %2018 = vmatmul.mubr.msk.f32.vlgmr.msra.gmra.mrb[0].mxu1 %vm327_vm6, %v491_v47  ;;  %v1835_v47 = vld [vmem:[%s2884_s3 + $0x178] sm:$0xf]  ;;  %s2312_s3 = smov [#allocation2]  }
 0x144   :  { %2198 = vmatpush3.bf16.msra.mxu1 %v2197_v46  ;;  %2026 = vmatprep.mubr.msk.f32.mxu1 %vm2311_vm5, %v2310_v20  ;;  %v1463_v46 = vrot.slane %v315_v37, 4 }
 0x145   :  { %2024 = vmatprep.subr.mxu1 %v2310_v20 }
 0x148   :  { %2025 = vmatpush3.msk.msra.mxu1 %vm331_vm4, %v1775_v48  ;;  %v1544_v48 = vrot.slane %v315_v37, 6 }
 0x149   :  { %2199 = vmatprep.subr.bf16.mxu1 %v2309_v19 }
 0x14b   :  { %2027 = vmatmul.mubr.msk.f32.vlgmr.msra.gmra.mrb[0].mxu1 %vm327_vm6, %v572_v52 }
 0x14c   :  { %2201 = vmatpush3.bf16.msra.mxu1 %v2200_v51  ;;  %2035 = vmatprep.mubr.msk.f32.mxu1 %vm2311_vm5, %v2310_v20 }
 0x14d   :  { %2033 = vmatprep.subr.mxu1 %v2310_v20 }
 0x150   :  { %2034 = vmatpush3.msk.msra.mxu1 %vm331_vm4, %v1780_v54 }
 0x151   :  { %2202 = vmatprep.subr.bf16.mxu1 %v2309_v19 }
 0x153   :  { %2036 = vmatmul.mubr.msk.f32.vlgmr.msra.gmra.mrb[0].mxu1 %vm327_vm6, %v313_v58 }
 0x154   :  { %2204 = vmatpush3.bf16.msra.mxu1 %v2203_v57  ;;  %2044 = vmatprep.mubr.msk.f32.mxu1 %vm2311_vm5, %v2310_v20 }
 0x155   :  { %2042 = vmatprep.subr.mxu1 %v2310_v20 }
 0x158   :  { %2043 = vmatpush3.msk.msra.mxu1 %vm331_vm4, %v1785_v59 }
 0x159   :  { %2205 = vmatprep.subr.bf16.mxu1 %v2309_v19 }
 0x15b   :  { %2045 = vmatmul.mubr.msk.f32.vlgmr.msra.gmra.mrb[0].mxu1 %vm327_vm6, %v734_v63 }
 0x15c   :  { %2207 = vmatpush3.bf16.msra.mxu1 %v2206_v62  ;;  %2053 = vmatprep.mubr.msk.f32.mxu1 %vm2311_vm5, %v2310_v20 }
 0x15d   :  { %2051 = vmatprep.subr.mxu1 %v2310_v20 }
 0x160   :  { %2052 = vmatpush3.msk.msra.mxu1 %vm331_vm4, %v1790_v0 }
 0x161   :  { %2208 = vmatprep.subr.bf16.mxu1 %v2309_v19 }
 0x163   :  { %2054 = vmatmul.mubr.msk.f32.vlgmr.msra.gmra.mrb[0].mxu1 %vm327_vm6, %v815_v4 }
 0x164   :  { %2210 = vmatpush3.bf16.msra.mxu1 %v2209_v3  ;;  %2062 = vmatprep.mubr.msk.f32.mxu1 %vm2311_vm5, %v2310_v20 }
 0x165   :  { %2060 = vmatprep.subr.mxu1 %v2310_v20 }
 0x168   :  { %2061 = vmatpush3.msk.msra.mxu1 %vm331_vm4, %v1795_v5 }
 0x169   :  { %2211 = vmatprep.subr.bf16.mxu1 %v2309_v19 }
 0x16b   :  { %2063 = vmatmul.mubr.msk.f32.vlgmr.msra.gmra.mrb[0].mxu1 %vm327_vm6, %v896_v9 }
 0x16c   :  { %2213 = vmatpush3.bf16.msra.mxu1 %v2212_v8  ;;  %2071 = vmatprep.mubr.msk.f32.mxu1 %vm2311_vm5, %v2310_v20 }
 0x16d   :  { %2069 = vmatprep.subr.mxu1 %v2310_v20 }
 0x170   :  { %2070 = vmatpush3.msk.msra.mxu1 %vm331_vm4, %v1800_v10 }
 0x171   :  { %2214 = vmatprep.subr.bf16.mxu1 %v2309_v19 }
 0x173   :  { %2072 = vmatmul.mubr.msk.f32.vlgmr.msra.gmra.mrb[0].mxu1 %vm327_vm6, %v314_v14 }
 0x174   :  { %2216 = vmatpush3.bf16.msra.mxu1 %v2215_v13  ;;  %2080 = vmatprep.mubr.msk.f32.mxu1 %vm2311_vm5, %v2310_v20 }
 0x175   :  { %2078 = vmatprep.subr.mxu1 %v2310_v20 }
 0x178   :  { %2079 = vmatpush3.msk.msra.mxu1 %vm331_vm4, %v1805_v15 }
 0x179   :  { %2217 = vmatprep.subr.bf16.mxu1 %v2309_v19 }
 0x17b   :  { %2081 = vmatmul.mubr.msk.f32.vlgmr.msra.gmra.mrb[0].mxu1 %vm327_vm6, %v1058_v21 }
 0x17c   :  { %2219 = vmatpush3.bf16.msra.mxu1 %v2218_v18  ;;  %2089 = vmatprep.mubr.msk.f32.mxu1 %vm2311_vm5, %v2310_v20 }
 0x17d   :  { %2087 = vmatprep.subr.mxu1 %v2310_v20 }
 0x180   :  { %2088 = vmatpush3.msk.msra.mxu1 %vm331_vm4, %v1810_v22 }
 0x181   :  { %2220 = vmatprep.subr.bf16.mxu1 %v2309_v19 }
 0x183   :  { %2090 = vmatmul.mubr.msk.f32.vlgmr.msra.gmra.mrb[0].mxu1 %vm327_vm6, %v1139_v26 }
 0x184   :  { %2222 = vmatpush3.bf16.msra.mxu1 %v2221_v25  ;;  %2098 = vmatprep.mubr.msk.f32.mxu1 %vm2311_vm5, %v2310_v20 }
 0x185   :  { %2096 = vmatprep.subr.mxu1 %v2310_v20 }
 0x188   :  { %2097 = vmatpush3.msk.msra.mxu1 %vm331_vm4, %v1815_v27 }
 0x189   :  { %2223 = vmatprep.subr.bf16.mxu1 %v2309_v19 }
 0x18b   :  { %2099 = vmatmul.mubr.msk.f32.vlgmr.msra.gmra.mrb[0].mxu1 %vm327_vm6, %v1220_v31 }
 0x18c   :  { %2225 = vmatpush3.bf16.msra.mxu1 %v2224_v30  ;;  %2107 = vmatprep.mubr.msk.f32.mxu1 %vm2311_vm5, %v2310_v20 }
 0x18d   :  { %2105 = vmatprep.subr.mxu1 %v2310_v20 }
 0x190   :  { %2106 = vmatpush3.msk.msra.mxu1 %vm331_vm4, %v1820_v32 }
 0x191   :  { %2226 = vmatprep.subr.bf16.mxu1 %v2309_v19 }
 0x193   :  { %2108 = vmatmul.mubr.msk.f32.vlgmr.msra.gmra.mrb[0].mxu1 %vm327_vm6, %v315_v37 }
 0x194   :  { %2228 = vmatpush3.bf16.msra.mxu1 %v2227_v36  ;;  %2116 = vmatprep.mubr.msk.f32.mxu1 %vm2311_vm5, %v2310_v20 }
 0x195   :  { %2114 = vmatprep.subr.mxu1 %v2310_v20 }
 0x198   :  { %2115 = vmatpush3.msk.msra.mxu1 %vm331_vm4, %v1825_v38 }
 0x199   :  { %2229 = vmatprep.subr.bf16.mxu1 %v2309_v19 }
 0x19b   :  { %2117 = vmatmul.mubr.msk.f32.vlgmr.msra.gmra.mrb[0].mxu1 %vm327_vm6, %v1382_v42 }
 0x19c   :  { %2231 = vmatpush3.bf16.msra.mxu1 %v2230_v41  ;;  %2125 = vmatprep.mubr.msk.f32.mxu1 %vm2311_vm5, %v2310_v20 }
 0x19d   :  { %2123 = vmatprep.subr.mxu1 %v2310_v20 }
 0x1a0   :  { %2124 = vmatpush3.msk.msra.mxu1 %vm331_vm4, %v1830_v43 }
 0x1a1   :  { %2232 = vmatprep.subr.bf16.mxu1 %v2309_v19  ;;  %v1760_v19 = vld [vmem:[%s2885_s4] ss:$0 sm:$0xff]  ;;  %s1734_s4 = sshll.u32 %s2312_s3, 4  ;;  %s1735_s4 = int_to_ptr.vmem [resolvable:$true] %s1734_s4 }
 0x1a2   :  { %p2289_p1 = scmp.lt.s32.totalorder %s1735_s4, %s1735_s4 }
 0x1a3   :  { %2126 = vmatmul.mubr.msk.f32.vlgmr.msra.gmra.mrb[0].mxu1 %vm327_vm6, %v1463_v46 }
 0x1a4   :  { %2234 = vmatpush3.bf16.msra.mxu1 %v2233_v45  ;;  %2134 = vmatprep.mubr.msk.f32.mxu1 %vm2311_vm5, %v2310_v20 }
 0x1a5   :  { %2132 = vmatprep.subr.mxu1 %v2310_v20  ;;  %v1838_v20 = vld [vmem:[%s2887_s6] ss:$0 sm:$0xff]  ;;  %s2284_s6 = scalar_lea.vmem %s1735_s4, 32 }
 0x1a6   :  { %p2285_p0 = scmp.ne.s32.totalorder %s1735_s4, %s2284_s6  ;;  %p2290_p2 = scmp.lt.s32.totalorder %s2284_s6, %s2284_s6 }
 0x1a8   :  { %2133 = vmatpush3.msk.msra.mxu1 %vm331_vm4, %v1835_v47  ;;  %p2291_p3 = por %p2290_p2, %p2289_p1 }
 0x1aa   :  { %p2292_p4 = pnand %p2291_p3, %p2285_p0 }
 0x1ab   :  { %2135 = vmatmul.mubr.msk.f32.vlgmr.msra.gmra.mrb[0].mxu1 %vm327_vm6, %v1544_v48 }
 0x27e   :  { %v1616_v49 = vpop.f32.mrb[0].mxu1 }
 0x27f   :  { %v2244_v50 = vadd.f32 %v1760_v19, %v1616_v49  ;;  %v2136_v51 = vpop.f32.mrb[1].mxu1 }
 0x281   :  { %v1621_v52 = vmax.f32 %v2244_v50, 0.0 }
 0x283   :  { %2152 = vmatmul.mubr.msk.f32.vlgmr.msra.gmra.mrb[32].mxu0 %vm1636_vm7, %v1621_v52 }
 0x356   :  { %v1709_v53 = vpop.f32.mrb[32].mxu0 }
 0x357   :  { %v1710_v54 = vadd.f32 %v1838_v20, %v1709_v53  ;;  %v2153_v55 = vpop.f32.mrb[33].mxu0 }
 0x359   :  { %v1714_v56 = vsel %vm1713_vm8, %v1710_v54, -inf }
 0x35a   :  { %1715 = vmax.xlane.f32.xlu0 %v1714_v56 }
 0x3e7   :  { %v1716_v57 = vpop.xlane.xlu0 %1715 }
 0x3e8   :  { %v1717_v58 = vsub.f32 %v1710_v54, %v1716_v57 }
 0x3ea   :  { %v1718_v59 = vmul.f32 1.442695, %v1717_v58 }
 0x3ec   :  { %2280 = vpow2.f32 %v1718_v59 }
 0x3f6   :  { %v2281_v60 = vpop.eup %2280 }
 0x3f7   :  { %v1720_v61 = vsel %vm1713_vm8, %v2281_v60, 0.0 }
 0x3f8   :  { %1721 = vadd.xlane.f32.xlu0 %v1720_v61 }
 0x485   :  { %v1722_v62 = vpop.xlane.xlu0 %1721 }
 0x486   :  { %2282 = vlog2.f32 %v1722_v62 }
 0x490   :  { %v2283_v63 = vpop.eup %2282 }
 0x491   :  { %v1724_v0 = vmul.f32 0.6931472, %v2283_v63 }
 0x493   :  { %v1725_v1 = vadd.f32 %v1724_v0, %v1716_v57 }
 0x495   :  { %v1726_v2 = vsub.f32 %v1710_v54, %v1725_v1 }
 0x497   :  { %1727 = vst.msk [vmem:[#allocation2] sm:$0x3] %vm1713_vm8, %v1726_v2 }
 0x498   :  { %2295 = shalt.err (!%p2292_p4)
}
 0x499   :  { %s2296_s20 = scalar_lea.hbm %s2888_s7, 32 }
 0x49a   :  { %p2297_p5 = scmp.ne.s32.totalorder %s2888_s7, %s2296_s20  ;;  %p2300_p6 = scmp.lt.u32.totalorder %s2296_s20, %s2888_s7 }
 0x49c   :  { %p2302_p7 = pnand %p2300_p6, %p2297_p5 }
 0x49e   :  { %2305 = shalt.err (!%p2302_p7)
}
 0x49f   :  { %1737 = dma.vmem_to_hbm [thread:$0]  %s1735_s4, 32, %s2888_s7, [#allocation3]  }
 0x4a0   :  { %2306 = dma.done.wait [#allocation3], 32  }
 0x4a1   :  { %2307 = vsyncadd [#allocation3], 4294967264 }
 0x4a2   :  { %1741 = vsyncpa [#allocation3], 1 }

</bundles_post_ra>
